<compile_context>
chip_gen: v5e
topology: v5e:2x2
jax: 0.10.0
libtpu: 0.0.40
codegen_flags: <defaults>
</compile_context>

<pallas_src>
import functools
import math

import numpy as np
import jax
import jax.numpy as jnp
from jax.experimental import pallas as pl
from jax.experimental.pallas import tpu as pltpu


_VMEM = pl.BlockSpec(memory_space=pltpu.MemorySpace.VMEM)


# ----------------------------- Pallas kernels -----------------------------

def _dpc_recurrence_kernel(feat_ref, wbb_ref, bbb_ref, wx3_ref, bx3_ref,
                           wh2_ref, woh_ref, wp1_ref, bp1_ref, wp2_ref, bp2_ref,
                           pred_ref, gt_ref,
                           *, N, pred_step, BM, f_real, FP, radius_log):
    """Fused backbone-projection + ConvGRU warm-up + prediction recurrence.

    feat_ref : (N*BM, FP)  pooled features, channels zero-padded to FP lanes,
               rows ordered (timestep, batch, spatial) so each timestep is a
               contiguous BM-row slice.
    Outputs:
      pred_ref : (pred_step*BM, FP) predictions, rows ordered (t, b, s)
      gt_ref   : (pred_step*BM, FP) pre-ReLU features of the last pred_step steps
    """
    f32 = jnp.float32
    t_warm = N - pred_step

    # Backbone 1x1x1 channel projection (channel dim zero-padded to FP lanes, so
    # this is one lane-dense MXU matmul fused here instead of a K=3 launch).
    feat = jnp.dot(feat_ref[...], wbb_ref[...],
                   preferred_element_type=f32) + bbb_ref[...]          # (N*BM, FP)

    wx3 = wx3_ref[...]          # (FP, 3*FP)  [Wux | Wrx | Wox]
    bx3 = bx3_ref[...]          # (1, 3*FP)
    wh2 = wh2_ref[...]          # (FP, 2*FP)  [Wuh | Wrh]
    woh = woh_ref[...]          # (FP, FP)

    def gru_step(xp, h):
        # DPC ConvGRUCell (kernel_size=1, per-pixel): h_new = h*(1-u) + tanh(.)*u
        # TODO(synk): ConvGRU source not provided in the reference; this is the
        # standard DPC single-layer kernel_size=1 cell.
        hp = jnp.dot(h, wh2, preferred_element_type=f32)               # (BM, 2*FP)
        u = jax.nn.sigmoid(xp[:, 0:FP] + hp[:, 0:FP])
        r = jax.nn.sigmoid(xp[:, FP:2 * FP] + hp[:, FP:2 * FP])
        o = jnp.tanh(xp[:, 2 * FP:3 * FP]
                     + jnp.dot(h * r, woh, preferred_element_type=f32))
        return h * (1.0 - u) + o * u

    # All warm-up input-to-hidden projections in ONE matmul, off the serial path.
    x_warm = jnp.maximum(feat[0:t_warm * BM, :], 0.0)                  # relu(feature)
    xp_all = jnp.dot(x_warm, wx3, preferred_element_type=f32) + bx3    # (t_warm*BM, 3*FP)

    h = jnp.zeros((BM, FP), f32)
    for t in range(t_warm):                                            # serial, unrolled
        h = gru_step(xp_all[t * BM:(t + 1) * BM, :], h)

    wp1 = wp1_ref[...]
    bp1 = bp1_ref[...]
    wp2 = wp2_ref[...]
    bp2 = bp2_ref[...]
    for s in range(pred_step):
        # network_pred: Conv2d 1x1 -> ReLU -> Conv2d 1x1 (fused matmuls)
        h1 = jnp.maximum(jnp.dot(h, wp1, preferred_element_type=f32) + bp1, 0.0)
        p = jnp.dot(h1, wp2, preferred_element_type=f32) + bp2
        if radius_log:
            # exp_activation fused in-kernel: exp only on the radius column.
            col = jax.lax.broadcasted_iota(jnp.int32, p.shape, 1)
            p = jnp.where(col == f_real - 1, jnp.exp(p), p)
        pred_ref[pl.ds(s * BM, BM), :] = p                             # lane-dense store
        # agg(relu(p_tmp), hidden)
        xp = jnp.dot(jnp.maximum(p, 0.0), wx3, preferred_element_type=f32) + bx3
        h = gru_step(xp, h)

    # gt = pre-ReLU features of the last pred_step timesteps.
    gt_ref[...] = feat[t_warm * BM:N * BM, :]


def pallas_dpc_recurrence(feat_rows, fp, *, N, pred_step, BM,
                          f_real, f_pad, radius_log):
    kern = functools.partial(
        _dpc_recurrence_kernel, N=N, pred_step=pred_step, BM=BM,
        f_real=f_real, FP=f_pad, radius_log=radius_log)
    args = (feat_rows, fp["w_bb"], fp["b_bb"], fp["w_x3"], fp["b_x3"],
            fp["w_h2"], fp["w_oh"], fp["w_p1"], fp["b_p1"], fp["w_p2"], fp["b_p2"])
    m_out = pred_step * BM
    return pl.pallas_call(
        kern,
        out_shape=(jax.ShapeDtypeStruct((m_out, f_pad), jnp.float32),
                   jax.ShapeDtypeStruct((m_out, f_pad), jnp.float32)),
        in_specs=[_VMEM] * len(args),
        out_specs=(_VMEM, _VMEM),
    )(*args)


def _score_kernel(pred_ref, gt_ref, o_ref, *, f_real):
    # distance='L2', distance_type='uncertain', radius_which='pred',
    # positive_vs_negative='same'.  Inputs are FP-lane-padded; the radius lives
    # in column (f_real-1); padded columns are exactly zero.
    f32 = jnp.float32
    p = pred_ref[...]                                     # (bm, FP)
    g = gt_ref[...]                                       # (K, FP)
    col = jax.lax.broadcasted_iota(jnp.int32, (1, p.shape[1]), 1)
    is_radius = col == f_real - 1
    emb_mask = jnp.where(is_radius, 0.0, 1.0).astype(f32)  # zero only the radius column
    pe = p * emb_mask                                     # pred embedding (full width)
    ge = g * emb_mask                                     # gt embedding  (full width)
    pr = jnp.sum(jnp.where(is_radius, p, 0.0), axis=1, keepdims=True)  # (bm,1) pred radius
    p2 = jnp.sum(pe * pe, axis=1, keepdims=True)          # (bm, 1)
    g2 = jnp.sum(ge * ge, axis=1)[None, :]                # (1, K)
    pg = jax.lax.dot_general(pe, ge, (((1,), (1,)), ((), ())),
                             preferred_element_type=f32)  # (bm, K)
    d2 = jnp.maximum(p2 + g2 - 2.0 * pg, 0.0)
    score = jnp.sqrt(d2)                                  # pairwise L2
    # final_score = max(score - pred_radius.T, 0)  (per-row pred radius)
    o_ref[...] = jnp.maximum(score - pr, 0.0)


def pallas_score(pred_flat, gt_flat, *, f_real, block_rows=256):
    mp, fp = pred_flat.shape
    k = gt_flat.shape[0]
    br = min(block_rows, mp)
    kern = functools.partial(_score_kernel, f_real=f_real)
    return pl.pallas_call(
        kern,
        out_shape=jax.ShapeDtypeStruct((mp, k), jnp.float32),
        grid=(pl.cdiv(mp, br),),
        in_specs=[pl.BlockSpec((br, fp), lambda i: (i, 0)),
                  pl.BlockSpec((k, fp), lambda i: (0, 0))],
        out_specs=pl.BlockSpec((br, k), lambda i: (i, 0)),
        compiler_params=pltpu.CompilerParams(
            dimension_semantics=("parallel",),
            vmem_limit_bytes=32 * 1024 * 1024),
    )(pred_flat, gt_flat)


# ----------------------------- params / glue -----------------------------

def init_params(key, in_channels, feature_size):
    """Deterministic synthetic parameters (reference uses orthogonal W / zero b)."""
    ks = jax.random.split(key, 9)
    w = lambda k, shape: (0.1 * jax.random.normal(k, shape)).astype(jnp.float32)
    z = lambda n: jnp.zeros((n,), jnp.float32)
    F = feature_size
    return dict(
        w_bb=w(ks[0], (in_channels, F)), b_bb=z(F),
        w_ux=w(ks[1], (F, F)), w_uh=w(ks[2], (F, F)), b_u=z(F),
        w_rx=w(ks[3], (F, F)), w_rh=w(ks[4], (F, F)), b_r=z(F),
        w_ox=w(ks[5], (F, F)), w_oh=w(ks[6], (F, F)), b_o=z(F),
        w_p1=w(ks[7], (F, F)), b_p1=z(F),
        w_p2=w(ks[8], (F, F)), b_p2=z(F),
    )


def fuse_and_pad_params(p, C, F, FP):
    """Concatenate gate weights and zero-pad the feature dim to FP lanes.

    Padded channels stay exactly zero through the GRU/MLP (zero weight rows,
    zero biases, zero initial hidden), so results on the first F channels are
    bit-for-bit the un-padded math.
    """
    f32 = jnp.float32

    def pad(w, rows, cols):
        return jnp.zeros((rows, cols), f32).at[:w.shape[0], :w.shape[1]].set(w)

    w_x3 = jnp.zeros((FP, 3 * FP), f32)
    w_x3 = w_x3.at[:F, 0 * FP:0 * FP + F].set(p["w_ux"])
    w_x3 = w_x3.at[:F, 1 * FP:1 * FP + F].set(p["w_rx"])
    w_x3 = w_x3.at[:F, 2 * FP:2 * FP + F].set(p["w_ox"])
    b_x3 = jnp.zeros((1, 3 * FP), f32)
    b_x3 = b_x3.at[0, 0 * FP:0 * FP + F].set(p["b_u"])
    b_x3 = b_x3.at[0, 1 * FP:1 * FP + F].set(p["b_r"])
    b_x3 = b_x3.at[0, 2 * FP:2 * FP + F].set(p["b_o"])

    w_h2 = jnp.zeros((FP, 2 * FP), f32)
    w_h2 = w_h2.at[:F, 0 * FP:0 * FP + F].set(p["w_uh"])
    w_h2 = w_h2.at[:F, 1 * FP:1 * FP + F].set(p["w_rh"])

    return dict(
        w_bb=pad(p["w_bb"], FP, FP),                      # (C,F) block in a (FP,FP) slab
        b_bb=pad(p["b_bb"].reshape(1, F), 1, FP),
        w_x3=w_x3, b_x3=b_x3,
        w_h2=w_h2,
        w_oh=pad(p["w_oh"], FP, FP),
        w_p1=pad(p["w_p1"], FP, FP),
        b_p1=pad(p["b_p1"].reshape(1, F), 1, FP),
        w_p2=pad(p["w_p2"], FP, FP),
        b_p2=pad(p["b_p2"].reshape(1, F), 1, FP),
    )


def build_mask(B, pred_step, last_size):
    """Exact translation of the int8 mask construction (host-side integer indexing)."""
    LS2 = last_size ** 2
    N = pred_step                               # N is reassigned to pred_step
    mask = np.zeros((B, pred_step, LS2, B, N, LS2), dtype=np.int8)
    mask[np.arange(B), :, :, np.arange(B), :, :] = -3
    for k in range(B):
        mask[k, :, np.arange(LS2), k, :, np.arange(LS2)] = -1
    tmp = np.ascontiguousarray(mask.transpose(0, 2, 1, 3, 5, 4)).reshape(
        B * LS2, pred_step, B * LS2, N)
    for j in range(B * LS2):
        tmp[j, np.arange(pred_step), j, np.arange(N - pred_step, N)] = 1
    mask = tmp.reshape(B, LS2, pred_step, B, LS2, N).transpose(0, 2, 1, 3, 5, 4)
    return jnp.asarray(mask)


def dpc_rnn_forward(block, params, *, sample_size, num_seq=8, seq_len=5,
                    pred_step=3, feature_size=32, radius_type="linear"):
    B, N, C, SL, H, W = block.shape
    F = feature_size
    FP = ((F + 127) // 128) * 128                        # lane-pad feature dim to 128
    last_duration = int(math.ceil(seq_len / 2))          # resnet8/10 path
    last_size = int(math.ceil(sample_size / 32))
    LS2 = last_size * last_size
    BM = B * LS2

    # TODO(synk): select_resnet / 3D-ResNet backbone source is not provided in the
    # reference; stand-in = temporal stride-2 subsample + 32x spatial avg pool.
    # The 1x1x1 channel projection and the F.avg_pool3d temporal mean (both linear,
    # so the mean commutes with the conv) are fused into the Pallas recurrence kernel.
    x = block.reshape(B * N, C, SL, H, W)[:, :, ::2, :, :]       # (BN, C, ld, H, W)
    sp = H // last_size
    pooled = x.reshape(B * N, C, last_duration, last_size, sp, last_size, sp
                       ).mean(axis=(2, 4, 6))                     # (BN, C, ls, ls)

    # Rows ordered (timestep, batch, i, j) so each GRU step is a contiguous BM-row slice.
    rows = pooled.reshape(B, N, C, last_size, last_size
                          ).transpose(1, 0, 3, 4, 2).reshape(N * BM, C)
    feat_rows = jnp.zeros((N * BM, FP), jnp.float32).at[:, :C].set(rows)

    fp = fuse_and_pad_params(params, C, F, FP)
    pred_tbs, gt_tbs = pallas_dpc_recurrence(
        feat_rows, fp, N=N, pred_step=pred_step, BM=BM,
        f_real=F, f_pad=FP, radius_log=(radius_type == "log"))

    def to_bts(a):
        # (t, b, s) rows -> (b, t, s) rows: matches the reference
        # pred.permute(0,1,3,4,2).view(B*pred_step*last_size**2, F) ordering.
        return a.reshape(pred_step, B, LS2, FP).transpose(1, 0, 2, 3
                         ).reshape(B * pred_step * LS2, FP)

    final_score = pallas_score(to_bts(pred_tbs), to_bts(gt_tbs), f_real=F)
    mask = build_mask(B, pred_step, last_size)
    return final_score, mask


if __name__ == "__main__":
    sample_size = 64                     # -> last_size = 2, LS2 = 4
    B, num_seq, C, seq_len = 2, 8, 3, 5  # -> last_duration = 3
    pred_step = 3
    feature_size = 32

    key = jax.random.PRNGKey(0)
    kp, kx = jax.random.split(key)
    params = init_params(kp, C, feature_size)
    block = jax.random.normal(
        kx, (B, num_seq, C, seq_len, sample_size, sample_size), jnp.float32)

    score, mask = dpc_rnn_forward(
        block, params, sample_size=sample_size, num_seq=num_seq,
        seq_len=seq_len, pred_step=pred_step, feature_size=feature_size)
    jax.block_until_ready((score, mask))

    M = B * pred_step * (sample_size // 32) ** 2
    assert score.shape == (M, M) and score.dtype == jnp.float32
    assert mask.shape == (B, pred_step, 4, B, pred_step, 4) and mask.dtype == jnp.int8
    assert bool(jnp.all(score >= 0.0))
    assert bool(jnp.all(jnp.isfinite(score)))
    print("KERNEL_OK")
</pallas_src>

<mosaic_0001>
module attributes {stable_mosaic.version = 11 : i64} {
  func.func @_dpc_recurrence_kernel(%arg0: memref<64x128xf32, #tpu.memory_space<vmem>>, %arg1: memref<128x128xf32, #tpu.memory_space<vmem>>, %arg2: memref<1x128xf32, #tpu.memory_space<vmem>>, %arg3: memref<128x384xf32, #tpu.memory_space<vmem>>, %arg4: memref<1x384xf32, #tpu.memory_space<vmem>>, %arg5: memref<128x256xf32, #tpu.memory_space<vmem>>, %arg6: memref<128x128xf32, #tpu.memory_space<vmem>>, %arg7: memref<128x128xf32, #tpu.memory_space<vmem>>, %arg8: memref<1x128xf32, #tpu.memory_space<vmem>>, %arg9: memref<128x128xf32, #tpu.memory_space<vmem>>, %arg10: memref<1x128xf32, #tpu.memory_space<vmem>>, %arg11: memref<24x128xf32, #tpu.memory_space<vmem>>, %arg12: memref<24x128xf32, #tpu.memory_space<vmem>>) attributes {dimension_semantics = [], scalar_prefetch = 0 : i64, scratch_operands = 0 : i64, tpu.core_type = #tpu.core_type<tc>} {
    %c0 = arith.constant 0 : index
    %c0_0 = arith.constant 0 : index
    %0 = vector.load %arg0[%c0, %c0_0] : memref<64x128xf32, #tpu.memory_space<vmem>>, vector<64x128xf32>
    %c0_1 = arith.constant 0 : index
    %c0_2 = arith.constant 0 : index
    %1 = vector.load %arg1[%c0_1, %c0_2] : memref<128x128xf32, #tpu.memory_space<vmem>>, vector<128x128xf32>
    %cst = arith.constant dense<0.000000e+00> : vector<64x128xf32>
    %2 = tpu.matmul %0, %1, %cst {dimension_numbers = #tpu.dot_dimension_numbers<[1], [0], [0], [1], [0, 0, 1, 1], [], []>} : vector<64x128xf32>, vector<128x128xf32>, vector<64x128xf32> -> vector<64x128xf32>
    %c0_3 = arith.constant 0 : index
    %c0_4 = arith.constant 0 : index
    %3 = vector.load %arg2[%c0_3, %c0_4] : memref<1x128xf32, #tpu.memory_space<vmem>>, vector<1x128xf32>
    %4 = vector.broadcast %3 : vector<1x128xf32> to vector<64x128xf32>
    %5 = arith.addf %2, %4 : vector<64x128xf32>
    %c0_5 = arith.constant 0 : index
    %c0_6 = arith.constant 0 : index
    %6 = vector.load %arg3[%c0_5, %c0_6] : memref<128x384xf32, #tpu.memory_space<vmem>>, vector<128x384xf32>
    %c0_7 = arith.constant 0 : index
    %c0_8 = arith.constant 0 : index
    %7 = vector.load %arg4[%c0_7, %c0_8] : memref<1x384xf32, #tpu.memory_space<vmem>>, vector<1x384xf32>
    %c0_9 = arith.constant 0 : index
    %c0_10 = arith.constant 0 : index
    %8 = vector.load %arg5[%c0_9, %c0_10] : memref<128x256xf32, #tpu.memory_space<vmem>>, vector<128x256xf32>
    %c0_11 = arith.constant 0 : index
    %c0_12 = arith.constant 0 : index
    %9 = vector.load %arg6[%c0_11, %c0_12] : memref<128x128xf32, #tpu.memory_space<vmem>>, vector<128x128xf32>
    %10 = vector.extract_strided_slice %5 {offsets = [0, 0], sizes = [40, 128], strides = [1, 1]} : vector<64x128xf32> to vector<40x128xf32>
    %cst_13 = arith.constant 0.000000e+00 : f32
    %11 = vector.broadcast %cst_13 : f32 to vector<40x128xf32>
    %12 = arith.maximumf %10, %11 : vector<40x128xf32>
    %cst_14 = arith.constant dense<0.000000e+00> : vector<40x384xf32>
    %13 = tpu.matmul %12, %6, %cst_14 {dimension_numbers = #tpu.dot_dimension_numbers<[1], [0], [0], [1], [0, 0, 1, 1], [], []>} : vector<40x128xf32>, vector<128x384xf32>, vector<40x384xf32> -> vector<40x384xf32>
    %14 = vector.broadcast %7 : vector<1x384xf32> to vector<40x384xf32>
    %15 = arith.addf %13, %14 : vector<40x384xf32>
    %cst_15 = arith.constant 0.000000e+00 : f32
    %16 = vector.broadcast %cst_15 : f32 to vector<8x128xf32>
    %17 = vector.extract_strided_slice %15 {offsets = [0, 0], sizes = [8, 384], strides = [1, 1]} : vector<40x384xf32> to vector<8x384xf32>
    %cst_16 = arith.constant dense<0.000000e+00> : vector<8x256xf32>
    %18 = tpu.matmul %16, %8, %cst_16 {dimension_numbers = #tpu.dot_dimension_numbers<[1], [0], [0], [1], [0, 0, 1, 1], [], []>} : vector<8x128xf32>, vector<128x256xf32>, vector<8x256xf32> -> vector<8x256xf32>
    %19 = vector.extract_strided_slice %17 {offsets = [0, 0], sizes = [8, 128], strides = [1, 1]} : vector<8x384xf32> to vector<8x128xf32>
    %20 = vector.extract_strided_slice %18 {offsets = [0, 0], sizes = [8, 128], strides = [1, 1]} : vector<8x256xf32> to vector<8x128xf32>
    %21 = arith.addf %19, %20 : vector<8x128xf32>
    %22 = arith.negf %21 : vector<8x128xf32>
    %23 = math.exp %22 : vector<8x128xf32>
    %cst_17 = arith.constant 1.000000e+00 : f32
    %24 = vector.broadcast %cst_17 : f32 to vector<8x128xf32>
    %25 = arith.addf %24, %23 : vector<8x128xf32>
    %26 = arith.divf %24, %25 : vector<8x128xf32>
    %27 = vector.extract_strided_slice %17 {offsets = [0, 128], sizes = [8, 128], strides = [1, 1]} : vector<8x384xf32> to vector<8x128xf32>
    %28 = vector.extract_strided_slice %18 {offsets = [0, 128], sizes = [8, 128], strides = [1, 1]} : vector<8x256xf32> to vector<8x128xf32>
    %29 = arith.addf %27, %28 : vector<8x128xf32>
    %30 = arith.negf %29 : vector<8x128xf32>
    %31 = math.exp %30 : vector<8x128xf32>
    %cst_18 = arith.constant 1.000000e+00 : f32
    %32 = vector.broadcast %cst_18 : f32 to vector<8x128xf32>
    %33 = arith.addf %32, %31 : vector<8x128xf32>
    %34 = arith.divf %32, %33 : vector<8x128xf32>
    %35 = vector.extract_strided_slice %17 {offsets = [0, 256], sizes = [8, 128], strides = [1, 1]} : vector<8x384xf32> to vector<8x128xf32>
    %36 = arith.mulf %16, %34 : vector<8x128xf32>
    %cst_19 = arith.constant dense<0.000000e+00> : vector<8x128xf32>
    %37 = tpu.matmul %36, %9, %cst_19 {dimension_numbers = #tpu.dot_dimension_numbers<[1], [0], [0], [1], [0, 0, 1, 1], [], []>} : vector<8x128xf32>, vector<128x128xf32>, vector<8x128xf32> -> vector<8x128xf32>
    %38 = arith.addf %35, %37 : vector<8x128xf32>
    %39 = math.tanh %38 : vector<8x128xf32>
    %cst_20 = arith.constant 1.000000e+00 : f32
    %40 = vector.broadcast %cst_20 : f32 to vector<8x128xf32>
    %41 = arith.subf %40, %26 : vector<8x128xf32>
    %42 = arith.mulf %16, %41 : vector<8x128xf32>
    %43 = arith.mulf %39, %26 : vector<8x128xf32>
    %44 = arith.addf %42, %43 : vector<8x128xf32>
    %45 = vector.extract_strided_slice %15 {offsets = [8, 0], sizes = [8, 384], strides = [1, 1]} : vector<40x384xf32> to vector<8x384xf32>
    %cst_21 = arith.constant dense<0.000000e+00> : vector<8x256xf32>
    %46 = tpu.matmul %44, %8, %cst_21 {dimension_numbers = #tpu.dot_dimension_numbers<[1], [0], [0], [1], [0, 0, 1, 1], [], []>} : vector<8x128xf32>, vector<128x256xf32>, vector<8x256xf32> -> vector<8x256xf32>
    %47 = vector.extract_strided_slice %45 {offsets = [0, 0], sizes = [8, 128], strides = [1, 1]} : vector<8x384xf32> to vector<8x128xf32>
    %48 = vector.extract_strided_slice %46 {offsets = [0, 0], sizes = [8, 128], strides = [1, 1]} : vector<8x256xf32> to vector<8x128xf32>
    %49 = arith.addf %47, %48 : vector<8x128xf32>
    %50 = arith.negf %49 : vector<8x128xf32>
    %51 = math.exp %50 : vector<8x128xf32>
    %cst_22 = arith.constant 1.000000e+00 : f32
    %52 = vector.broadcast %cst_22 : f32 to vector<8x128xf32>
    %53 = arith.addf %52, %51 : vector<8x128xf32>
    %54 = arith.divf %52, %53 : vector<8x128xf32>
    %55 = vector.extract_strided_slice %45 {offsets = [0, 128], sizes = [8, 128], strides = [1, 1]} : vector<8x384xf32> to vector<8x128xf32>
    %56 = vector.extract_strided_slice %46 {offsets = [0, 128], sizes = [8, 128], strides = [1, 1]} : vector<8x256xf32> to vector<8x128xf32>
    %57 = arith.addf %55, %56 : vector<8x128xf32>
    %58 = arith.negf %57 : vector<8x128xf32>
    %59 = math.exp %58 : vector<8x128xf32>
    %cst_23 = arith.constant 1.000000e+00 : f32
    %60 = vector.broadcast %cst_23 : f32 to vector<8x128xf32>
    %61 = arith.addf %60, %59 : vector<8x128xf32>
    %62 = arith.divf %60, %61 : vector<8x128xf32>
    %63 = vector.extract_strided_slice %45 {offsets = [0, 256], sizes = [8, 128], strides = [1, 1]} : vector<8x384xf32> to vector<8x128xf32>
    %64 = arith.mulf %44, %62 : vector<8x128xf32>
    %cst_24 = arith.constant dense<0.000000e+00> : vector<8x128xf32>
    %65 = tpu.matmul %64, %9, %cst_24 {dimension_numbers = #tpu.dot_dimension_numbers<[1], [0], [0], [1], [0, 0, 1, 1], [], []>} : vector<8x128xf32>, vector<128x128xf32>, vector<8x128xf32> -> vector<8x128xf32>
    %66 = arith.addf %63, %65 : vector<8x128xf32>
    %67 = math.tanh %66 : vector<8x128xf32>
    %cst_25 = arith.constant 1.000000e+00 : f32
    %68 = vector.broadcast %cst_25 : f32 to vector<8x128xf32>
    %69 = arith.subf %68, %54 : vector<8x128xf32>
    %70 = arith.mulf %44, %69 : vector<8x128xf32>
    %71 = arith.mulf %67, %54 : vector<8x128xf32>
    %72 = arith.addf %70, %71 : vector<8x128xf32>
    %73 = vector.extract_strided_slice %15 {offsets = [16, 0], sizes = [8, 384], strides = [1, 1]} : vector<40x384xf32> to vector<8x384xf32>
    %cst_26 = arith.constant dense<0.000000e+00> : vector<8x256xf32>
    %74 = tpu.matmul %72, %8, %cst_26 {dimension_numbers = #tpu.dot_dimension_numbers<[1], [0], [0], [1], [0, 0, 1, 1], [], []>} : vector<8x128xf32>, vector<128x256xf32>, vector<8x256xf32> -> vector<8x256xf32>
    %75 = vector.extract_strided_slice %73 {offsets = [0, 0], sizes = [8, 128], strides = [1, 1]} : vector<8x384xf32> to vector<8x128xf32>
    %76 = vector.extract_strided_slice %74 {offsets = [0, 0], sizes = [8, 128], strides = [1, 1]} : vector<8x256xf32> to vector<8x128xf32>
    %77 = arith.addf %75, %76 : vector<8x128xf32>
    %78 = arith.negf %77 : vector<8x128xf32>
    %79 = math.exp %78 : vector<8x128xf32>
    %cst_27 = arith.constant 1.000000e+00 : f32
    %80 = vector.broadcast %cst_27 : f32 to vector<8x128xf32>
    %81 = arith.addf %80, %79 : vector<8x128xf32>
    %82 = arith.divf %80, %81 : vector<8x128xf32>
    %83 = vector.extract_strided_slice %73 {offsets = [0, 128], sizes = [8, 128], strides = [1, 1]} : vector<8x384xf32> to vector<8x128xf32>
    %84 = vector.extract_strided_slice %74 {offsets = [0, 128], sizes = [8, 128], strides = [1, 1]} : vector<8x256xf32> to vector<8x128xf32>
    %85 = arith.addf %83, %84 : vector<8x128xf32>
    %86 = arith.negf %85 : vector<8x128xf32>
    %87 = math.exp %86 : vector<8x128xf32>
    %cst_28 = arith.constant 1.000000e+00 : f32
    %88 = vector.broadcast %cst_28 : f32 to vector<8x128xf32>
    %89 = arith.addf %88, %87 : vector<8x128xf32>
    %90 = arith.divf %88, %89 : vector<8x128xf32>
    %91 = vector.extract_strided_slice %73 {offsets = [0, 256], sizes = [8, 128], strides = [1, 1]} : vector<8x384xf32> to vector<8x128xf32>
    %92 = arith.mulf %72, %90 : vector<8x128xf32>
    %cst_29 = arith.constant dense<0.000000e+00> : vector<8x128xf32>
    %93 = tpu.matmul %92, %9, %cst_29 {dimension_numbers = #tpu.dot_dimension_numbers<[1], [0], [0], [1], [0, 0, 1, 1], [], []>} : vector<8x128xf32>, vector<128x128xf32>, vector<8x128xf32> -> vector<8x128xf32>
    %94 = arith.addf %91, %93 : vector<8x128xf32>
    %95 = math.tanh %94 : vector<8x128xf32>
    %cst_30 = arith.constant 1.000000e+00 : f32
    %96 = vector.broadcast %cst_30 : f32 to vector<8x128xf32>
    %97 = arith.subf %96, %82 : vector<8x128xf32>
    %98 = arith.mulf %72, %97 : vector<8x128xf32>
    %99 = arith.mulf %95, %82 : vector<8x128xf32>
    %100 = arith.addf %98, %99 : vector<8x128xf32>
    %101 = vector.extract_strided_slice %15 {offsets = [24, 0], sizes = [8, 384], strides = [1, 1]} : vector<40x384xf32> to vector<8x384xf32>
    %cst_31 = arith.constant dense<0.000000e+00> : vector<8x256xf32>
    %102 = tpu.matmul %100, %8, %cst_31 {dimension_numbers = #tpu.dot_dimension_numbers<[1], [0], [0], [1], [0, 0, 1, 1], [], []>} : vector<8x128xf32>, vector<128x256xf32>, vector<8x256xf32> -> vector<8x256xf32>
    %103 = vector.extract_strided_slice %101 {offsets = [0, 0], sizes = [8, 128], strides = [1, 1]} : vector<8x384xf32> to vector<8x128xf32>
    %104 = vector.extract_strided_slice %102 {offsets = [0, 0], sizes = [8, 128], strides = [1, 1]} : vector<8x256xf32> to vector<8x128xf32>
    %105 = arith.addf %103, %104 : vector<8x128xf32>
    %106 = arith.negf %105 : vector<8x128xf32>
    %107 = math.exp %106 : vector<8x128xf32>
    %cst_32 = arith.constant 1.000000e+00 : f32
    %108 = vector.broadcast %cst_32 : f32 to vector<8x128xf32>
    %109 = arith.addf %108, %107 : vector<8x128xf32>
    %110 = arith.divf %108, %109 : vector<8x128xf32>
    %111 = vector.extract_strided_slice %101 {offsets = [0, 128], sizes = [8, 128], strides = [1, 1]} : vector<8x384xf32> to vector<8x128xf32>
    %112 = vector.extract_strided_slice %102 {offsets = [0, 128], sizes = [8, 128], strides = [1, 1]} : vector<8x256xf32> to vector<8x128xf32>
    %113 = arith.addf %111, %112 : vector<8x128xf32>
    %114 = arith.negf %113 : vector<8x128xf32>
    %115 = math.exp %114 : vector<8x128xf32>
    %cst_33 = arith.constant 1.000000e+00 : f32
    %116 = vector.broadcast %cst_33 : f32 to vector<8x128xf32>
    %117 = arith.addf %116, %115 : vector<8x128xf32>
    %118 = arith.divf %116, %117 : vector<8x128xf32>
    %119 = vector.extract_strided_slice %101 {offsets = [0, 256], sizes = [8, 128], strides = [1, 1]} : vector<8x384xf32> to vector<8x128xf32>
    %120 = arith.mulf %100, %118 : vector<8x128xf32>
    %cst_34 = arith.constant dense<0.000000e+00> : vector<8x128xf32>
    %121 = tpu.matmul %120, %9, %cst_34 {dimension_numbers = #tpu.dot_dimension_numbers<[1], [0], [0], [1], [0, 0, 1, 1], [], []>} : vector<8x128xf32>, vector<128x128xf32>, vector<8x128xf32> -> vector<8x128xf32>
    %122 = arith.addf %119, %121 : vector<8x128xf32>
    %123 = math.tanh %122 : vector<8x128xf32>
    %cst_35 = arith.constant 1.000000e+00 : f32
    %124 = vector.broadcast %cst_35 : f32 to vector<8x128xf32>
    %125 = arith.subf %124, %110 : vector<8x128xf32>
    %126 = arith.mulf %100, %125 : vector<8x128xf32>
    %127 = arith.mulf %123, %110 : vector<8x128xf32>
    %128 = arith.addf %126, %127 : vector<8x128xf32>
    %129 = vector.extract_strided_slice %15 {offsets = [32, 0], sizes = [8, 384], strides = [1, 1]} : vector<40x384xf32> to vector<8x384xf32>
    %cst_36 = arith.constant dense<0.000000e+00> : vector<8x256xf32>
    %130 = tpu.matmul %128, %8, %cst_36 {dimension_numbers = #tpu.dot_dimension_numbers<[1], [0], [0], [1], [0, 0, 1, 1], [], []>} : vector<8x128xf32>, vector<128x256xf32>, vector<8x256xf32> -> vector<8x256xf32>
    %131 = vector.extract_strided_slice %129 {offsets = [0, 0], sizes = [8, 128], strides = [1, 1]} : vector<8x384xf32> to vector<8x128xf32>
    %132 = vector.extract_strided_slice %130 {offsets = [0, 0], sizes = [8, 128], strides = [1, 1]} : vector<8x256xf32> to vector<8x128xf32>
    %133 = arith.addf %131, %132 : vector<8x128xf32>
    %134 = arith.negf %133 : vector<8x128xf32>
    %135 = math.exp %134 : vector<8x128xf32>
    %cst_37 = arith.constant 1.000000e+00 : f32
    %136 = vector.broadcast %cst_37 : f32 to vector<8x128xf32>
    %137 = arith.addf %136, %135 : vector<8x128xf32>
    %138 = arith.divf %136, %137 : vector<8x128xf32>
    %139 = vector.extract_strided_slice %129 {offsets = [0, 128], sizes = [8, 128], strides = [1, 1]} : vector<8x384xf32> to vector<8x128xf32>
    %140 = vector.extract_strided_slice %130 {offsets = [0, 128], sizes = [8, 128], strides = [1, 1]} : vector<8x256xf32> to vector<8x128xf32>
    %141 = arith.addf %139, %140 : vector<8x128xf32>
    %142 = arith.negf %141 : vector<8x128xf32>
    %143 = math.exp %142 : vector<8x128xf32>
    %cst_38 = arith.constant 1.000000e+00 : f32
    %144 = vector.broadcast %cst_38 : f32 to vector<8x128xf32>
    %145 = arith.addf %144, %143 : vector<8x128xf32>
    %146 = arith.divf %144, %145 : vector<8x128xf32>
    %147 = vector.extract_strided_slice %129 {offsets = [0, 256], sizes = [8, 128], strides = [1, 1]} : vector<8x384xf32> to vector<8x128xf32>
    %148 = arith.mulf %128, %146 : vector<8x128xf32>
    %cst_39 = arith.constant dense<0.000000e+00> : vector<8x128xf32>
    %149 = tpu.matmul %148, %9, %cst_39 {dimension_numbers = #tpu.dot_dimension_numbers<[1], [0], [0], [1], [0, 0, 1, 1], [], []>} : vector<8x128xf32>, vector<128x128xf32>, vector<8x128xf32> -> vector<8x128xf32>
    %150 = arith.addf %147, %149 : vector<8x128xf32>
    %151 = math.tanh %150 : vector<8x128xf32>
    %cst_40 = arith.constant 1.000000e+00 : f32
    %152 = vector.broadcast %cst_40 : f32 to vector<8x128xf32>
    %153 = arith.subf %152, %138 : vector<8x128xf32>
    %154 = arith.mulf %128, %153 : vector<8x128xf32>
    %155 = arith.mulf %151, %138 : vector<8x128xf32>
    %156 = arith.addf %154, %155 : vector<8x128xf32>
    %c0_41 = arith.constant 0 : index
    %c0_42 = arith.constant 0 : index
    %157 = vector.load %arg7[%c0_41, %c0_42] : memref<128x128xf32, #tpu.memory_space<vmem>>, vector<128x128xf32>
    %c0_43 = arith.constant 0 : index
    %c0_44 = arith.constant 0 : index
    %158 = vector.load %arg8[%c0_43, %c0_44] : memref<1x128xf32, #tpu.memory_space<vmem>>, vector<1x128xf32>
    %c0_45 = arith.constant 0 : index
    %c0_46 = arith.constant 0 : index
    %159 = vector.load %arg9[%c0_45, %c0_46] : memref<128x128xf32, #tpu.memory_space<vmem>>, vector<128x128xf32>
    %c0_47 = arith.constant 0 : index
    %c0_48 = arith.constant 0 : index
    %160 = vector.load %arg10[%c0_47, %c0_48] : memref<1x128xf32, #tpu.memory_space<vmem>>, vector<1x128xf32>
    %cst_49 = arith.constant dense<0.000000e+00> : vector<8x128xf32>
    %161 = tpu.matmul %156, %157, %cst_49 {dimension_numbers = #tpu.dot_dimension_numbers<[1], [0], [0], [1], [0, 0, 1, 1], [], []>} : vector<8x128xf32>, vector<128x128xf32>, vector<8x128xf32> -> vector<8x128xf32>
    %162 = vector.broadcast %158 : vector<1x128xf32> to vector<8x128xf32>
    %163 = arith.addf %161, %162 : vector<8x128xf32>
    %cst_50 = arith.constant 0.000000e+00 : f32
    %164 = vector.broadcast %cst_50 : f32 to vector<8x128xf32>
    %165 = arith.maximumf %163, %164 : vector<8x128xf32>
    %cst_51 = arith.constant dense<0.000000e+00> : vector<8x128xf32>
    %166 = tpu.matmul %165, %159, %cst_51 {dimension_numbers = #tpu.dot_dimension_numbers<[1], [0], [0], [1], [0, 0, 1, 1], [], []>} : vector<8x128xf32>, vector<128x128xf32>, vector<8x128xf32> -> vector<8x128xf32>
    %167 = vector.broadcast %160 : vector<1x128xf32> to vector<8x128xf32>
    %168 = arith.addf %166, %167 : vector<8x128xf32>
    %c0_52 = arith.constant 0 : index
    %c0_53 = arith.constant 0 : index
    %169 = vector.load %arg11[%c0_52, %c0_53] : memref<24x128xf32, #tpu.memory_space<vmem>>, vector<8x128xf32>
    tpu.vector_store %arg11[%c0_52, %c0_53], %168 {strides = array<i32>} : memref<24x128xf32, #tpu.memory_space<vmem>>, vector<8x128xf32>,
    %cst_54 = arith.constant 0.000000e+00 : f32
    %170 = vector.broadcast %cst_54 : f32 to vector<8x128xf32>
    %171 = arith.maximumf %168, %170 : vector<8x128xf32>
    %cst_55 = arith.constant dense<0.000000e+00> : vector<8x384xf32>
    %172 = tpu.matmul %171, %6, %cst_55 {dimension_numbers = #tpu.dot_dimension_numbers<[1], [0], [0], [1], [0, 0, 1, 1], [], []>} : vector<8x128xf32>, vector<128x384xf32>, vector<8x384xf32> -> vector<8x384xf32>
    %173 = vector.broadcast %7 : vector<1x384xf32> to vector<8x384xf32>
    %174 = arith.addf %172, %173 : vector<8x384xf32>
    %cst_56 = arith.constant dense<0.000000e+00> : vector<8x256xf32>
    %175 = tpu.matmul %156, %8, %cst_56 {dimension_numbers = #tpu.dot_dimension_numbers<[1], [0], [0], [1], [0, 0, 1, 1], [], []>} : vector<8x128xf32>, vector<128x256xf32>, vector<8x256xf32> -> vector<8x256xf32>
    %176 = vector.extract_strided_slice %174 {offsets = [0, 0], sizes = [8, 128], strides = [1, 1]} : vector<8x384xf32> to vector<8x128xf32>
    %177 = vector.extract_strided_slice %175 {offsets = [0, 0], sizes = [8, 128], strides = [1, 1]} : vector<8x256xf32> to vector<8x128xf32>
    %178 = arith.addf %176, %177 : vector<8x128xf32>
    %179 = arith.negf %178 : vector<8x128xf32>
    %180 = math.exp %179 : vector<8x128xf32>
    %cst_57 = arith.constant 1.000000e+00 : f32
    %181 = vector.broadcast %cst_57 : f32 to vector<8x128xf32>
    %182 = arith.addf %181, %180 : vector<8x128xf32>
    %183 = arith.divf %181, %182 : vector<8x128xf32>
    %184 = vector.extract_strided_slice %174 {offsets = [0, 128], sizes = [8, 128], strides = [1, 1]} : vector<8x384xf32> to vector<8x128xf32>
    %185 = vector.extract_strided_slice %175 {offsets = [0, 128], sizes = [8, 128], strides = [1, 1]} : vector<8x256xf32> to vector<8x128xf32>
    %186 = arith.addf %184, %185 : vector<8x128xf32>
    %187 = arith.negf %186 : vector<8x128xf32>
    %188 = math.exp %187 : vector<8x128xf32>
    %cst_58 = arith.constant 1.000000e+00 : f32
    %189 = vector.broadcast %cst_58 : f32 to vector<8x128xf32>
    %190 = arith.addf %189, %188 : vector<8x128xf32>
    %191 = arith.divf %189, %190 : vector<8x128xf32>
    %192 = vector.extract_strided_slice %174 {offsets = [0, 256], sizes = [8, 128], strides = [1, 1]} : vector<8x384xf32> to vector<8x128xf32>
    %193 = arith.mulf %156, %191 : vector<8x128xf32>
    %cst_59 = arith.constant dense<0.000000e+00> : vector<8x128xf32>
    %194 = tpu.matmul %193, %9, %cst_59 {dimension_numbers = #tpu.dot_dimension_numbers<[1], [0], [0], [1], [0, 0, 1, 1], [], []>} : vector<8x128xf32>, vector<128x128xf32>, vector<8x128xf32> -> vector<8x128xf32>
    %195 = arith.addf %192, %194 : vector<8x128xf32>
    %196 = math.tanh %195 : vector<8x128xf32>
    %cst_60 = arith.constant 1.000000e+00 : f32
    %197 = vector.broadcast %cst_60 : f32 to vector<8x128xf32>
    %198 = arith.subf %197, %183 : vector<8x128xf32>
    %199 = arith.mulf %156, %198 : vector<8x128xf32>
    %200 = arith.mulf %196, %183 : vector<8x128xf32>
    %201 = arith.addf %199, %200 : vector<8x128xf32>
    %cst_61 = arith.constant dense<0.000000e+00> : vector<8x128xf32>
    %202 = tpu.matmul %201, %157, %cst_61 {dimension_numbers = #tpu.dot_dimension_numbers<[1], [0], [0], [1], [0, 0, 1, 1], [], []>} : vector<8x128xf32>, vector<128x128xf32>, vector<8x128xf32> -> vector<8x128xf32>
    %203 = vector.broadcast %158 : vector<1x128xf32> to vector<8x128xf32>
    %204 = arith.addf %202, %203 : vector<8x128xf32>
    %cst_62 = arith.constant 0.000000e+00 : f32
    %205 = vector.broadcast %cst_62 : f32 to vector<8x128xf32>
    %206 = arith.maximumf %204, %205 : vector<8x128xf32>
    %cst_63 = arith.constant dense<0.000000e+00> : vector<8x128xf32>
    %207 = tpu.matmul %206, %159, %cst_63 {dimension_numbers = #tpu.dot_dimension_numbers<[1], [0], [0], [1], [0, 0, 1, 1], [], []>} : vector<8x128xf32>, vector<128x128xf32>, vector<8x128xf32> -> vector<8x128xf32>
    %208 = vector.broadcast %160 : vector<1x128xf32> to vector<8x128xf32>
    %209 = arith.addf %207, %208 : vector<8x128xf32>
    %c8 = arith.constant 8 : index
    %c0_64 = arith.constant 0 : index
    %210 = vector.load %arg11[%c8, %c0_64] : memref<24x128xf32, #tpu.memory_space<vmem>>, vector<8x128xf32>
    tpu.vector_store %arg11[%c8, %c0_64], %209 {strides = array<i32>} : memref<24x128xf32, #tpu.memory_space<vmem>>, vector<8x128xf32>,
    %cst_65 = arith.constant 0.000000e+00 : f32
    %211 = vector.broadcast %cst_65 : f32 to vector<8x128xf32>
    %212 = arith.maximumf %209, %211 : vector<8x128xf32>
    %cst_66 = arith.constant dense<0.000000e+00> : vector<8x384xf32>
    %213 = tpu.matmul %212, %6, %cst_66 {dimension_numbers = #tpu.dot_dimension_numbers<[1], [0], [0], [1], [0, 0, 1, 1], [], []>} : vector<8x128xf32>, vector<128x384xf32>, vector<8x384xf32> -> vector<8x384xf32>
    %214 = vector.broadcast %7 : vector<1x384xf32> to vector<8x384xf32>
    %215 = arith.addf %213, %214 : vector<8x384xf32>
    %cst_67 = arith.constant dense<0.000000e+00> : vector<8x256xf32>
    %216 = tpu.matmul %201, %8, %cst_67 {dimension_numbers = #tpu.dot_dimension_numbers<[1], [0], [0], [1], [0, 0, 1, 1], [], []>} : vector<8x128xf32>, vector<128x256xf32>, vector<8x256xf32> -> vector<8x256xf32>
    %217 = vector.extract_strided_slice %215 {offsets = [0, 0], sizes = [8, 128], strides = [1, 1]} : vector<8x384xf32> to vector<8x128xf32>
    %218 = vector.extract_strided_slice %216 {offsets = [0, 0], sizes = [8, 128], strides = [1, 1]} : vector<8x256xf32> to vector<8x128xf32>
    %219 = arith.addf %217, %218 : vector<8x128xf32>
    %220 = arith.negf %219 : vector<8x128xf32>
    %221 = math.exp %220 : vector<8x128xf32>
    %cst_68 = arith.constant 1.000000e+00 : f32
    %222 = vector.broadcast %cst_68 : f32 to vector<8x128xf32>
    %223 = arith.addf %222, %221 : vector<8x128xf32>
    %224 = arith.divf %222, %223 : vector<8x128xf32>
    %225 = vector.extract_strided_slice %215 {offsets = [0, 128], sizes = [8, 128], strides = [1, 1]} : vector<8x384xf32> to vector<8x128xf32>
    %226 = vector.extract_strided_slice %216 {offsets = [0, 128], sizes = [8, 128], strides = [1, 1]} : vector<8x256xf32> to vector<8x128xf32>
    %227 = arith.addf %225, %226 : vector<8x128xf32>
    %228 = arith.negf %227 : vector<8x128xf32>
    %229 = math.exp %228 : vector<8x128xf32>
    %cst_69 = arith.constant 1.000000e+00 : f32
    %230 = vector.broadcast %cst_69 : f32 to vector<8x128xf32>
    %231 = arith.addf %230, %229 : vector<8x128xf32>
    %232 = arith.divf %230, %231 : vector<8x128xf32>
    %233 = vector.extract_strided_slice %215 {offsets = [0, 256], sizes = [8, 128], strides = [1, 1]} : vector<8x384xf32> to vector<8x128xf32>
    %234 = arith.mulf %201, %232 : vector<8x128xf32>
    %cst_70 = arith.constant dense<0.000000e+00> : vector<8x128xf32>
    %235 = tpu.matmul %234, %9, %cst_70 {dimension_numbers = #tpu.dot_dimension_numbers<[1], [0], [0], [1], [0, 0, 1, 1], [], []>} : vector<8x128xf32>, vector<128x128xf32>, vector<8x128xf32> -> vector<8x128xf32>
    %236 = arith.addf %233, %235 : vector<8x128xf32>
    %237 = math.tanh %236 : vector<8x128xf32>
    %cst_71 = arith.constant 1.000000e+00 : f32
    %238 = vector.broadcast %cst_71 : f32 to vector<8x128xf32>
    %239 = arith.subf %238, %224 : vector<8x128xf32>
    %240 = arith.mulf %201, %239 : vector<8x128xf32>
    %241 = arith.mulf %237, %224 : vector<8x128xf32>
    %242 = arith.addf %240, %241 : vector<8x128xf32>
    %cst_72 = arith.constant dense<0.000000e+00> : vector<8x128xf32>
    %243 = tpu.matmul %242, %157, %cst_72 {dimension_numbers = #tpu.dot_dimension_numbers<[1], [0], [0], [1], [0, 0, 1, 1], [], []>} : vector<8x128xf32>, vector<128x128xf32>, vector<8x128xf32> -> vector<8x128xf32>
    %244 = vector.broadcast %158 : vector<1x128xf32> to vector<8x128xf32>
    %245 = arith.addf %243, %244 : vector<8x128xf32>
    %cst_73 = arith.constant 0.000000e+00 : f32
    %246 = vector.broadcast %cst_73 : f32 to vector<8x128xf32>
    %247 = arith.maximumf %245, %246 : vector<8x128xf32>
    %cst_74 = arith.constant dense<0.000000e+00> : vector<8x128xf32>
    %248 = tpu.matmul %247, %159, %cst_74 {dimension_numbers = #tpu.dot_dimension_numbers<[1], [0], [0], [1], [0, 0, 1, 1], [], []>} : vector<8x128xf32>, vector<128x128xf32>, vector<8x128xf32> -> vector<8x128xf32>
    %249 = vector.broadcast %160 : vector<1x128xf32> to vector<8x128xf32>
    %250 = arith.addf %248, %249 : vector<8x128xf32>
    %c16 = arith.constant 16 : index
    %c0_75 = arith.constant 0 : index
    %251 = vector.load %arg11[%c16, %c0_75] : memref<24x128xf32, #tpu.memory_space<vmem>>, vector<8x128xf32>
    tpu.vector_store %arg11[%c16, %c0_75], %250 {strides = array<i32>} : memref<24x128xf32, #tpu.memory_space<vmem>>, vector<8x128xf32>,
    %252 = vector.extract_strided_slice %5 {offsets = [40, 0], sizes = [24, 128], strides = [1, 1]} : vector<64x128xf32> to vector<24x128xf32>
    %c0_76 = arith.constant 0 : index
    %c0_77 = arith.constant 0 : index
    %253 = vector.load %arg12[%c0_76, %c0_77] : memref<24x128xf32, #tpu.memory_space<vmem>>, vector<24x128xf32>
    tpu.vector_store %arg12[%c0_76, %c0_77], %252 {strides = array<i32>} : memref<24x128xf32, #tpu.memory_space<vmem>>, vector<24x128xf32>,
    return
  }
}

</mosaic_0001>

<bundles_post_ra>
// kernel: tpu_custom_call.1
= control target key start
LH: loop header
LB: loop body
LE: loop exit
PB: predicated region body
PF: predicated region fallthrough
CT: control target
= control target key end

     0   :  { %18 = vsyncpa [#allocation3], 0  ;;  %s3058_s0 = inlined_call_operand.hbm [shape: f32[64,128], index: 0, kind: input, shape index: {}]   ;;  %s3059_s1 = inlined_call_operand.hbm [shape: f32[128,128], index: 1, kind: input, shape index: {}]   ;;  %s3060_s2 = inlined_call_operand.hbm [shape: f32[1,128], index: 2, kind: input, shape index: {}]   ;;  %s3061_s3 = inlined_call_operand.hbm [shape: f32[128,384], index: 3, kind: input, shape index: {}]   ;;  %s3062_s4 = inlined_call_operand.vmem [shape: f32[1,384], index: 4, kind: input, shape index: {}]   ;;  %s3063_s5 = inlined_call_operand.hbm [shape: f32[128,256], index: 5, kind: input, shape index: {}]   ;;  %s3064_s6 = inlined_call_operand.hbm [shape: f32[128,128], index: 6, kind: input, shape index: {}]   ;;  %s3065_s7 = inlined_call_operand.hbm [shape: f32[128,128], index: 7, kind: input, shape index: {}]   ;;  %s3066_s8 = inlined_call_operand.vmem [shape: f32[1,128], index: 8, kind: input, shape index: {}]   ;;  %s3067_s9 = inlined_call_operand.hbm [shape: f32[128,128], index: 9, kind: input, shape index: {}]   ;;  %s3068_s10 = inlined_call_operand.vmem [shape: f32[1,128], index: 10, kind: input, shape index: {}]   ;;  %s3069_s11 = inlined_call_operand.hbm [shape: f32[24,128], index: 11, kind: output, shape index: {0}]   ;;  %s3070_s12 = inlined_call_operand.hbm [shape: f32[24,128], index: 12, kind: output, shape index: {1}]  }
   0x1   :  { %19 = vsyncpa [#allocation6], 0 }
   0x2   :  { %20 = vsyncpa [#allocation9], 0 }
   0x3   :  { %21 = vsyncpa [#allocation12], 0 }
   0x4   :  { %22 = vsyncpa [#allocation15], 0 }
   0x5   :  { %23 = vsyncpa [#allocation4], 0 }
   0x6   :  { %24 = vsyncpa [#allocation18], 0  ;;  %s42_s23 = sshll.u32 %s3059_s1, 4  ;;  %s1974_s24 = smov [#allocation5]   ;;  %s43_s23 = int_to_ptr.hbm [resolvable:$true] %s42_s23 }
   0x7   :  { %s44_s25 = sshll.u32 %s1974_s24, 4  ;;  %s66_s28 = sshll.u32 %s3061_s3, 4  ;;  %s45_s25 = int_to_ptr.vmem [resolvable:$true] %s44_s25  ;;  %s67_s28 = int_to_ptr.hbm [resolvable:$true] %s66_s28 }
   0x8   :  { %s1975_s29 = smov 128   ;;  %s1976_s30 = smov 8  }
   0x9   :  { %50 = dma.hbm_to_vmem [thread:$0]  %s43_s23, 2048, %s45_s25, [#allocation6], %s1975_s29, %s1975_s29, %s1976_s30  }
   0xa   :  { %s1977_s13 = smov [#allocation8]   ;;  %s1978_s15 = smov 384  }
   0xb   :  { %s68_s14 = sshll.u32 %s1977_s13, 4  ;;  %s1979_s1 = smov 24   ;;  %s69_s14 = int_to_ptr.vmem [resolvable:$true] %s68_s14 }
   0xc   :  { %74 = dma.hbm_to_vmem [thread:$0]  %s67_s28, 6144, %s69_s14, [#allocation9], %s1978_s15, %s1978_s15, %s1979_s1  }
   0xd   :  { %s94_s18 = sshll.u32 %s3064_s6, 4  ;;  %s1980_s19 = smov [#allocation11]   ;;  %s95_s18 = int_to_ptr.hbm [resolvable:$true] %s94_s18 }
   0xe   :  { %s96_s3 = sshll.u32 %s1980_s19, 4  ;;  %s29_s22 = sshll.u32 %s3058_s0, 4  ;;  %s97_s3 = int_to_ptr.vmem [resolvable:$true] %s96_s3  ;;  %s30_s22 = int_to_ptr.hbm [resolvable:$true] %s29_s22 }
   0xf   :  { %102 = dma.hbm_to_vmem [thread:$0]  %s95_s18, 2048, %s97_s3, [#allocation12], %s1975_s29, %s1975_s29, %s1976_s30  }
  0x10   :  { %s1981_s23 = smov [#allocation2]   ;;  %s56_s27 = sshll.u32 %s3060_s2, 4  ;;  %s57_s27 = int_to_ptr.hbm [resolvable:$true] %s56_s27 }
  0x11   :  { %s31_s24 = sshll.u32 %s1981_s23, 4  ;;  %s81_s0 = sshll.u32 %s3063_s5, 4  ;;  %s32_s24 = int_to_ptr.vmem [resolvable:$true] %s31_s24  ;;  %s82_s0 = int_to_ptr.hbm [resolvable:$true] %s81_s0 }
  0x12   :  { %37 = dma.hbm_to_vmem [thread:$0]  %s30_s22, 1024, %s32_s24, [#allocation3], %s1975_s29, %s1975_s29, %s1976_s30  }
  0x13   :  { %s1982_s13 = smov [#allocation7]   ;;  %s1983_s15 = smov [#allocation10]  }
  0x14   :  { %s58_s14 = sshll.u32 %s1982_s13, 4  ;;  %s83_s1 = sshll.u32 %s1983_s15, 4  ;;  %s59_s14 = int_to_ptr.vmem [resolvable:$true] %s58_s14  ;;  %s84_s1 = int_to_ptr.vmem [resolvable:$true] %s83_s1 }
  0x15   :  { %61 = dma.hbm_to_vmem [thread:$0]  %s57_s27, 16, %s59_s14, [#allocation6]  }
  0x16   :  { %s1984_s16 = smov 256   ;;  %s1985_s2 = smov 16  }
  0x17   :  { %89 = dma.hbm_to_vmem [thread:$0]  %s82_s0, 4096, %s84_s1, [#allocation9], %s1984_s16, %s1984_s16, %s1985_s2  }
  0x18   :  { %s107_s19 = sshll.u32 %s3065_s7, 4  ;;  %s1986_s3 = smov [#allocation13]   ;;  %s108_s19 = int_to_ptr.hbm [resolvable:$true] %s107_s19 }
  0x19   :  { %s109_s20 = sshll.u32 %s1986_s3, 4  ;;  %s122_s22 = sshll.u32 %s3067_s9, 4  ;;  %s110_s20 = int_to_ptr.vmem [resolvable:$true] %s109_s20  ;;  %s123_s22 = int_to_ptr.hbm [resolvable:$true] %s122_s22 }
  0x1a   :  { %115 = dma.hbm_to_vmem [thread:$0]  %s108_s19, 2048, %s110_s20, [#allocation12], %s1975_s29, %s1975_s29, %s1976_s30  }
  0x1b   :  { %s1987_s23 = smov [#allocation14]  }
  0x1c   :  { %s124_s24 = sshll.u32 %s1987_s23, 4  ;;  %s125_s24 = int_to_ptr.vmem [resolvable:$true] %s124_s24 }
  0x1d   :  { %130 = dma.hbm_to_vmem [thread:$0]  %s123_s22, 2048, %s125_s24, [#allocation15], %s1975_s29, %s1975_s29, %s1976_s30  }
  0x1e   :  { %1960 = dma.done.wait [#allocation3], 1024  }
  0x1f   :  { %1961 = vsyncadd [#allocation3], 4294966272 }
  0x20   :  { %1962 = dma.done.wait [#allocation6], 2064  }
  0x21   :  { %1963 = vsyncadd [#allocation6], 4294965232 }
  0x22   :  { %1964 = dma.done.wait [#allocation9], 10240  }
  0x23   :  { %1965 = vsyncadd [#allocation9], 4294957056 }
  0x24   :  { %1966 = dma.done.wait [#allocation12], 4096  }
  0x25   :  { %1967 = vsyncadd [#allocation12], 4294963200 }
  0x26   :  { %1968 = dma.done.wait [#allocation15], 2048  }
  0x27   :  { %1969 = vsyncadd [#allocation15], 4294965248  ;;  %v188_v0 = vld [vmem:[#allocation5 + $0x78] sm:$0xff]  ;;  %v187_v1 = vld [vmem:[#allocation5 + $0x70] sm:$0xff]  ;;  %s1498_s0 = sshll.u32 %s3070_s12, 4  ;;  %s1990_s13 = smov [#allocation16]   ;;  %s1499_s0 = int_to_ptr.hbm [resolvable:$true] %s1498_s0 }
  0x28   :  { %193 = vmatpush.msra.mxu0 %v188_v0  ;;  %v186_v2 = vld [vmem:[#allocation5 + $0x68] sm:$0xff]  ;;  %v185_v3 = vld [vmem:[#allocation5 + $0x60] sm:$0xff]  ;;  %v184_v4 = vld [vmem:[#allocation5 + $0x58] sm:$0xff]  ;;  %s1483_s14 = sshll.u32 %s1990_s13, 4  ;;  %s1485_s16 = sshll.u32 %s3069_s11, 4  ;;  %s1484_s14 = int_to_ptr.vmem [resolvable:$true] %s1483_s14  ;;  %s1486_s16 = int_to_ptr.hbm [resolvable:$true] %s1485_s16 }
  0x29   :  { %v183_v5 = vld [vmem:[#allocation5 + $0x50] sm:$0xff]  ;;  %v182_v6 = vld [vmem:[#allocation5 + $0x48] sm:$0xff]  ;;  %v181_v7 = vld [vmem:[#allocation5 + $0x40] sm:$0xff] }
  0x2a   :  { %194 = vmatpush.msra.mxu0 %v187_v1  ;;  %v180_v8 = vld [vmem:[#allocation5 + $0x38] sm:$0xff]  ;;  %v179_v9 = vld [vmem:[#allocation5 + $0x30] sm:$0xff]  ;;  %v178_v10 = vld [vmem:[#allocation5 + $0x28] sm:$0xff] }
  0x2b   :  { %v177_v11 = vld [vmem:[#allocation5 + $0x20] sm:$0xff]  ;;  %v176_v12 = vld [vmem:[#allocation5 + $0x18] sm:$0xff]  ;;  %v175_v13 = vld [vmem:[#allocation5 + $0x10] sm:$0xff] }
  0x2c   :  { %195 = vmatpush.msra.mxu0 %v186_v2  ;;  %v174_v14 = vld [vmem:[#allocation5 + $0x8] sm:$0xff]  ;;  %v173_v15 = vld [vmem:[#allocation5] sm:$0xff]  ;;  %v280_v18 = vld [vmem:[#allocation8 + $0x170] sm:$0xff] }
  0x2d   :  { %v165_v16 = vld [vmem:[#allocation2] sm:$0xff]  ;;  %v279_v17 = vld [vmem:[#allocation8 + $0x168] sm:$0xff]  ;;  %375 = vmatpush.msra.mxu2 %v280_v18  ;;  %v276_v20 = vld [vmem:[#allocation8 + $0x150] sm:$0xff] }
  0x2e   :  { %196 = vmatpush.msra.mxu0 %v185_v3  ;;  %v281_v19 = vld [vmem:[#allocation8 + $0x178] sm:$0xff]  ;;  %343 = vmatpush.msra.mxu1 %v279_v17  ;;  %v278_v22 = vld [vmem:[#allocation8 + $0x160] sm:$0xff]  ;;  %v275_v25 = vld [vmem:[#allocation8 + $0x148] sm:$0xff] }
  0x2f   :  { %v277_v21 = vld [vmem:[#allocation8 + $0x158] sm:$0xff]  ;;  %407 = vmatpush.msra.mxu3 %v281_v19  ;;  %v274_v24 = vld [vmem:[#allocation8 + $0x140] sm:$0xff]  ;;  %v271_v27 = vld [vmem:[#allocation8 + $0x128] sm:$0xff] }
  0x30   :  { %197 = vmatpush.msra.mxu0 %v184_v4  ;;  %v273_v23 = vld [vmem:[#allocation8 + $0x138] sm:$0xff]  ;;  %344 = vmatpush.msra.mxu1 %v276_v20  ;;  %v270_v26 = vld [vmem:[#allocation8 + $0x120] sm:$0xff]  ;;  %v272_v29 = vld [vmem:[#allocation8 + $0x130] sm:$0xff] }
  0x31   :  { %376 = vmatpush.msra.mxu2 %v277_v21  ;;  %408 = vmatpush.msra.mxu3 %v278_v22  ;;  %v166_v28 = vld [vmem:[#allocation2 + $0x8] sm:$0xff]  ;;  %v268_v31 = vld [vmem:[#allocation8 + $0x110] sm:$0xff]  ;;  %v269_v32 = vld [vmem:[#allocation8 + $0x118] sm:$0xff] }
  0x32   :  { %198 = vmatpush.msra.mxu0 %v183_v5  ;;  %345 = vmatpush.msra.mxu1 %v273_v23  ;;  %v267_v30 = vld [vmem:[#allocation8 + $0x108] sm:$0xff]  ;;  %v264_v33 = vld [vmem:[#allocation8 + $0xf0] sm:$0xff]  ;;  %v265_v34 = vld [vmem:[#allocation8 + $0xf8] sm:$0xff] }
  0x33   :  { %377 = vmatpush.msra.mxu2 %v274_v24  ;;  %409 = vmatpush.msra.mxu3 %v275_v25  ;;  %v266_v35 = vld [vmem:[#allocation8 + $0x100] sm:$0xff]  ;;  %v261_v36 = vld [vmem:[#allocation8 + $0xd8] sm:$0xff]  ;;  %v263_v38 = vld [vmem:[#allocation8 + $0xe8] sm:$0xff] }
  0x34   :  { %199 = vmatpush.msra.mxu0 %v182_v6  ;;  %346 = vmatpush.msra.mxu1 %v270_v26  ;;  %v262_v37 = vld [vmem:[#allocation8 + $0xe0] sm:$0xff]  ;;  %v259_v40 = vld [vmem:[#allocation8 + $0xc8] sm:$0xff]  ;;  %v260_v42 = vld [vmem:[#allocation8 + $0xd0] sm:$0xff] }
  0x35   :  { %378 = vmatpush.msra.mxu2 %v271_v27  ;;  %410 = vmatpush.msra.mxu3 %v272_v29  ;;  %v258_v39 = vld [vmem:[#allocation8 + $0xc0] sm:$0xff]  ;;  %v167_v41 = vld [vmem:[#allocation2 + $0x10] sm:$0xff]  ;;  %v257_v45 = vld [vmem:[#allocation8 + $0xb8] sm:$0xff] }
  0x36   :  { %200 = vmatpush.msra.mxu0 %v181_v7  ;;  %347 = vmatpush.msra.mxu1 %v267_v30  ;;  %v255_v43 = vld [vmem:[#allocation8 + $0xa8] sm:$0xff]  ;;  %v256_v44 = vld [vmem:[#allocation8 + $0xb0] sm:$0xff]  ;;  %v253_v47 = vld [vmem:[#allocation8 + $0x98] sm:$0xff] }
  0x37   :  { %379 = vmatpush.msra.mxu2 %v268_v31  ;;  %411 = vmatpush.msra.mxu3 %v269_v32  ;;  %v252_v46 = vld [vmem:[#allocation8 + $0x90] sm:$0xff]  ;;  %v254_v48 = vld [vmem:[#allocation8 + $0xa0] sm:$0xff]  ;;  %v249_v49 = vld [vmem:[#allocation8 + $0x78] sm:$0xff] }
  0x38   :  { %201 = vmatpush.msra.mxu0 %v180_v8  ;;  %348 = vmatpush.msra.mxu1 %v264_v33  ;;  %v250_v50 = vld [vmem:[#allocation8 + $0x80] sm:$0xff]  ;;  %v251_v51 = vld [vmem:[#allocation8 + $0x88] sm:$0xff]  ;;  %v168_v54 = vld [vmem:[#allocation2 + $0x18] sm:$0xff] }
  0x39   :  { %380 = vmatpush.msra.mxu2 %v265_v34  ;;  %412 = vmatpush.msra.mxu3 %v266_v35  ;;  %v246_v52 = vld [vmem:[#allocation8 + $0x60] sm:$0xff]  ;;  %v247_v53 = vld [vmem:[#allocation8 + $0x68] sm:$0xff]  ;;  %v248_v55 = vld [vmem:[#allocation8 + $0x70] sm:$0xff] }
  0x3a   :  { %202 = vmatpush.msra.mxu0 %v179_v9  ;;  %349 = vmatpush.msra.mxu1 %v261_v36  ;;  %v243_v56 = vld [vmem:[#allocation8 + $0x48] sm:$0xff]  ;;  %v244_v57 = vld [vmem:[#allocation8 + $0x50] sm:$0xff]  ;;  %v245_v58 = vld [vmem:[#allocation8 + $0x58] sm:$0xff] }
  0x3b   :  { %381 = vmatpush.msra.mxu2 %v262_v37  ;;  %413 = vmatpush.msra.mxu3 %v263_v38  ;;  %v169_v59 = vld [vmem:[#allocation2 + $0x20] sm:$0xff]  ;;  %v240_v60 = vld [vmem:[#allocation8 + $0x30] sm:$0xff]  ;;  %v239_v1 = vld [vmem:[#allocation8 + $0x28] sm:$0xff] }
  0x3c   :  { %203 = vmatpush.msra.mxu0 %v178_v10  ;;  %350 = vmatpush.msra.mxu1 %v258_v39  ;;  %v241_v61 = vld [vmem:[#allocation8 + $0x38] sm:$0xff]  ;;  %v242_v62 = vld [vmem:[#allocation8 + $0x40] sm:$0xff]  ;;  %v235_v3 = vld [vmem:[#allocation8 + $0x8] sm:$0xff] }
  0x3d   :  { %382 = vmatpush.msra.mxu2 %v259_v40  ;;  %414 = vmatpush.msra.mxu3 %v260_v42  ;;  %v237_v63 = vld [vmem:[#allocation8 + $0x18] sm:$0xff]  ;;  %v238_v0 = vld [vmem:[#allocation8 + $0x20] sm:$0xff]  ;;  %v236_v4 = vld [vmem:[#allocation8 + $0x10] sm:$0xff] }
  0x3e   :  { %204 = vmatpush.msra.mxu0 %v177_v11  ;;  %351 = vmatpush.msra.mxu1 %v255_v43  ;;  %v234_v2 = vld [vmem:[#allocation8] sm:$0xff]  ;;  %v2095_v5 = vld [vmem:[#allocation10 + $0xf8] sm:$0xff]  ;;  %v2098_v6 = vld [vmem:[#allocation10 + $0xe8] sm:$0xff] }
  0x3f   :  { %383 = vmatpush.msra.mxu2 %v256_v44  ;;  %415 = vmatpush.msra.mxu3 %v257_v45  ;;  %v2100_v7 = vld [vmem:[#allocation10 + $0xd8] sm:$0xff]  ;;  %v2104_v8 = vld [vmem:[#allocation10 + $0xc8] sm:$0xff]  ;;  %v2106_v9 = vld [vmem:[#allocation10 + $0xf0] sm:$0xff] }
  0x40   :  { %205 = vmatpush.msra.mxu0 %v176_v12  ;;  %352 = vmatpush.msra.mxu1 %v252_v46  ;;  %v2109_v10 = vld [vmem:[#allocation10 + $0xb8] sm:$0xff]  ;;  %v2113_v11 = vld [vmem:[#allocation10 + $0xe0] sm:$0xff]  ;;  %v2118_v12 = vld [vmem:[#allocation10 + $0xd0] sm:$0xff] }
  0x41   :  { %384 = vmatpush.msra.mxu2 %v253_v47  ;;  %416 = vmatpush.msra.mxu3 %v254_v48  ;;  %v2134_v17 = vld [vmem:[#allocation10 + $0x88] sm:$0xff]  ;;  %v2139_v18 = vld [vmem:[#allocation10 + $0xa0] sm:$0xff]  ;;  %v2143_v19 = vld [vmem:[#allocation10 + $0x90] sm:$0xff] }
  0x42   :  { %206 = vmatpush.msra.mxu0 %v175_v13  ;;  %353 = vmatpush.msra.mxu1 %v249_v49  ;;  %v2121_v13 = vld [vmem:[#allocation10 + $0xa8] sm:$0xff]  ;;  %v2145_v20 = vld [vmem:[#allocation10 + $0x78] sm:$0xff]  ;;  %v2148_v21 = vld [vmem:[#allocation10 + $0x80] sm:$0xff] }
  0x43   :  { %385 = vmatpush.msra.mxu2 %v250_v50  ;;  %417 = vmatpush.msra.mxu3 %v251_v51  ;;  %v2150_v22 = vld [vmem:[#allocation10 + $0x68] sm:$0xff]  ;;  %v2154_v23 = vld [vmem:[#allocation7] ss:$0 sm:$0xff]  ;;  %v2159_v24 = vld [vmem:[#allocation10 + $0x70] sm:$0xff] }
  0x44   :  { %207 = vmatpush.msra.mxu0 %v174_v14  ;;  %354 = vmatpush.msra.mxu1 %v246_v52  ;;  %v2123_v14 = vld [vmem:[#allocation10 + $0xc0] sm:$0xff]  ;;  %v2161_v25 = vld [vmem:[#allocation10 + $0x58] sm:$0xff]  ;;  %v2171_v29 = vld [vmem:[#allocation10 + $0x50] sm:$0xff] }
  0x45   :  { %386 = vmatpush.msra.mxu2 %v247_v53  ;;  %418 = vmatpush.msra.mxu3 %v248_v55  ;;  %3142 = vst [vmem:[#allocation26_spill] sm:$0xff] %v2161_v25  ;;  %v2166_v27 = vld [vmem:[#allocation10 + $0x60] sm:$0xff]  ;;  %v2173_v31 = vld [vmem:[#allocation10 + $0x48] sm:$0xff]  ;;  %v2176_v32 = vld [vmem:[#allocation10 + $0x38] sm:$0xff]  ;;  %v1988_v53 = vmov 0.0  }
  0x46   :  { %208 = vmatpush.msra.mxu0 %v173_v15  ;;  %355 = vmatpush.msra.mxu1 %v243_v56  ;;  %v2125_v15 = vld [vmem:[#allocation10 + $0x98] sm:$0xff]  ;;  %3143 = vst [vmem:[#allocation27_spill] sm:$0xff] %v2173_v31  ;;  %v2180_v33 = vld [vmem:[#allocation10 + $0x40] sm:$0xff]  ;;  %v2183_v34 = vld [vmem:[#allocation10 + $0x30] sm:$0xff] }
  0x47   :  { %209 = vmatmul.f32.vlgmr.msra.gmra.mxu0 %v165_v16  ;;  %387 = vmatpush.msra.mxu2 %v244_v57  ;;  %v2132_v16 = vld [vmem:[#allocation10 + $0xb0] sm:$0xff]  ;;  %3144 = vst [vmem:[#allocation28_spill] sm:$0xff] %v2176_v32  ;;  %v2185_v35 = vld [vmem:[#allocation10 + $0x28] sm:$0xff]  ;;  %v2188_v36 = vld [vmem:[#allocation10 + $0x18] sm:$0xff] }
  0x48   :  { %419 = vmatpush.msra.mxu3 %v245_v58  ;;  %356 = vmatpush.msra.mxu1 %v240_v60  ;;  %3145 = vst [vmem:[#allocation29_spill] sm:$0xff] %v2185_v35  ;;  %v2192_v38 = vld [vmem:[#allocation10 + $0x20] sm:$0xff]  ;;  %v2196_v40 = vld [vmem:[#allocation10 + $0x8] sm:$0xff]  ;;  %v2201_v42 = vld [vmem:[#allocation10 + $0x10] sm:$0xff] }
  0x49   :  { %388 = vmatpush.msra.mxu2 %v241_v61  ;;  %546 = vmatpush.msrb.mxu0 %v2106_v9  ;;  %3146 = vst [vmem:[#allocation30_spill] sm:$0xff] %v2188_v36  ;;  %v2205_v43 = vld [vmem:[#allocation10] sm:$0xff]  ;;  %v2248_v55 = vld [vmem:[#allocation11 + $0x78] sm:$0xff]  ;;  %v2255_v57 = vld [vmem:[#allocation11 + $0x70] sm:$0xff] }
  0x4a   :  { %420 = vmatpush.msra.mxu3 %v242_v62  ;;  %357 = vmatpush.msra.mxu1 %v237_v63  ;;  %3147 = vst [vmem:[#allocation31_spill] sm:$0xff] %v2196_v40  ;;  %v2259_v58 = vld [vmem:[#allocation11 + $0x68] sm:$0xff]  ;;  %v2266_v60 = vld [vmem:[#allocation11 + $0x60] sm:$0xff]  ;;  %v2271_v61 = vld [vmem:[#allocation11 + $0x58] sm:$0xff] }
  0x4b   :  { %389 = vmatpush.msra.mxu2 %v238_v0  ;;  %547 = vmatpush.msrb.mxu0 %v2113_v11  ;;  %v2276_v62 = vld [vmem:[#allocation11 + $0x50] sm:$0xff]  ;;  %v2281_v63 = vld [vmem:[#allocation11 + $0x48] sm:$0xff] }
  0x4c   :  { %421 = vmatpush.msra.mxu3 %v239_v1  ;;  %358 = vmatpush.msra.mxu1 %v234_v2  ;;  %v2288_v1 = vld [vmem:[#allocation11 + $0x40] sm:$0xff]  ;;  %v2292_v2 = vld [vmem:[#allocation11 + $0x38] sm:$0xff] }
  0x4d   :  { %390 = vmatpush.msra.mxu2 %v235_v3  ;;  %548 = vmatpush.msrb.mxu0 %v2118_v12  ;;  %v2295_v3 = vld [vmem:[#allocation11 + $0x30] sm:$0xff] }
  0x4e   :  { %422 = vmatpush.msra.mxu3 %v236_v4  ;;  %439 = vmatpush.msrb.mxu1 %v2106_v9  ;;  %v2300_v4 = vld [vmem:[#allocation11 + $0x28] sm:$0xff] }
  0x4f   :  { %212 = vmatmul.f32.gmra.mxu0 %v166_v28  ;;  %459 = vmatpush.msrb.mxu2 %v2095_v5 }
  0x50   :  { %440 = vmatpush.msrb.mxu1 %v2113_v11  ;;  %549 = vmatpush.msrb.mxu0 %v2123_v14 }
  0x51   :  { %460 = vmatpush.msrb.mxu2 %v2098_v6  ;;  %520 = vmatpush.msrb.mxu3 %v2248_v55 }
  0x52   :  { %441 = vmatpush.msrb.mxu1 %v2118_v12  ;;  %550 = vmatpush.msrb.mxu0 %v2132_v16 }
  0x53   :  { %461 = vmatpush.msrb.mxu2 %v2100_v7  ;;  %521 = vmatpush.msrb.mxu3 %v2255_v57 }
  0x54   :  { %442 = vmatpush.msrb.mxu1 %v2123_v14  ;;  %551 = vmatpush.msrb.mxu0 %v2139_v18 }
  0x55   :  { %462 = vmatpush.msrb.mxu2 %v2104_v8  ;;  %522 = vmatpush.msrb.mxu3 %v2259_v58 }
  0x56   :  { %443 = vmatpush.msrb.mxu1 %v2132_v16  ;;  %552 = vmatpush.msrb.mxu0 %v2143_v19 }
  0x57   :  { %215 = vmatmul.f32.gmra.mxu0 %v167_v41  ;;  %463 = vmatpush.msrb.mxu2 %v2109_v10 }
  0x58   :  { %444 = vmatpush.msrb.mxu1 %v2139_v18  ;;  %553 = vmatpush.msrb.mxu0 %v2148_v21 }
  0x59   :  { %464 = vmatpush.msrb.mxu2 %v2121_v13  ;;  %523 = vmatpush.msrb.mxu3 %v2266_v60 }
  0x5a   :  { %445 = vmatpush.msrb.mxu1 %v2143_v19  ;;  %554 = vmatpush.msrb.mxu0 %v2159_v24 }
  0x5b   :  { %465 = vmatpush.msrb.mxu2 %v2125_v15  ;;  %524 = vmatpush.msrb.mxu3 %v2271_v61 }
  0x5c   :  { %446 = vmatpush.msrb.mxu1 %v2148_v21  ;;  %555 = vmatpush.msrb.mxu0 %v2166_v27 }
  0x5d   :  { %466 = vmatpush.msrb.mxu2 %v2134_v17  ;;  %525 = vmatpush.msrb.mxu3 %v2276_v62 }
  0x5e   :  { %447 = vmatpush.msrb.mxu1 %v2159_v24  ;;  %556 = vmatpush.msrb.mxu0 %v2171_v29 }
  0x5f   :  { %218 = vmatmul.f32.gmra.mxu0 %v168_v54  ;;  %467 = vmatpush.msrb.mxu2 %v2145_v20 }
  0x60   :  { %448 = vmatpush.msrb.mxu1 %v2166_v27  ;;  %557 = vmatpush.msrb.mxu0 %v2180_v33 }
  0x61   :  { %468 = vmatpush.msrb.mxu2 %v2150_v22  ;;  %526 = vmatpush.msrb.mxu3 %v2281_v63 }
  0x62   :  { %449 = vmatpush.msrb.mxu1 %v2171_v29  ;;  %558 = vmatpush.msrb.mxu0 %v2183_v34 }
  0x63   :  { %469 = vmatpush.msrb.mxu2 %v2161_v25  ;;  %527 = vmatpush.msrb.mxu3 %v2288_v1 }
  0x64   :  { %450 = vmatpush.msrb.mxu1 %v2180_v33  ;;  %559 = vmatpush.msrb.mxu0 %v2192_v38 }
  0x65   :  { %470 = vmatpush.msrb.mxu2 %v2173_v31  ;;  %528 = vmatpush.msrb.mxu3 %v2292_v2 }
  0x66   :  { %451 = vmatpush.msrb.mxu1 %v2183_v34  ;;  %560 = vmatpush.msrb.mxu0 %v2201_v42 }
  0x67   :  { %221 = vmatmul.f32.gmra.mxu0 %v169_v59  ;;  %471 = vmatpush.msrb.mxu2 %v2176_v32 }
  0x68   :  { %452 = vmatpush.msrb.mxu1 %v2192_v38  ;;  %561 = vmatpush.msrb.mxu0 %v2205_v43 }
  0x69   :  { %472 = vmatpush.msrb.mxu2 %v2185_v35  ;;  %529 = vmatpush.msrb.mxu3 %v2295_v3 }
  0x6a   :  { %453 = vmatpush.msrb.mxu1 %v2201_v42  ;;  %673 = vmatpush.msra.mxu0 %v2095_v5 }
  0x6b   :  { %473 = vmatpush.msrb.mxu2 %v2188_v36  ;;  %530 = vmatpush.msrb.mxu3 %v2300_v4 }
  0x6c   :  { %454 = vmatpush.msrb.mxu1 %v2205_v43  ;;  %674 = vmatpush.msra.mxu0 %v2098_v6 }
  0x6d   :  { %474 = vmatpush.msrb.mxu2 %v2196_v40 }
  0x6e   :  { %675 = vmatpush.msra.mxu0 %v2100_v7 }
  0x70   :  { %676 = vmatpush.msra.mxu0 %v2104_v8 }
  0x72   :  { %677 = vmatpush.msra.mxu0 %v2109_v10 }
  0x74   :  { %678 = vmatpush.msra.mxu0 %v2121_v13 }
  0x76   :  { %679 = vmatpush.msra.mxu0 %v2125_v15 }
  0x78   :  { %680 = vmatpush.msra.mxu0 %v2134_v17 }
  0x7a   :  { %681 = vmatpush.msra.mxu0 %v2145_v20 }
  0x7c   :  { %682 = vmatpush.msra.mxu0 %v2150_v22 }
  0x7e   :  { %683 = vmatpush.msra.mxu0 %v2161_v25 }
  0x80   :  { %684 = vmatpush.msra.mxu0 %v2173_v31 }
  0x82   :  { %685 = vmatpush.msra.mxu0 %v2176_v32 }
  0x84   :  { %686 = vmatpush.msra.mxu0 %v2185_v35 }
  0x86   :  { %687 = vmatpush.msra.mxu0 %v2188_v36 }
  0x88   :  { %688 = vmatpush.msra.mxu0 %v2196_v40 }
  0xc4   :  { %v210_v26 = vpop.f32.mrf.mxu0 }
  0xc5   :  { %v211_v28 = vadd.f32 %v2154_v23, %v210_v26  ;;  %v2305_v26 = vld [vmem:[#allocation11 + $0x20] sm:$0xff] }
  0xc6   :  { %531 = vmatpush.msrb.mxu3 %v2305_v26 }
  0xc7   :  { %v331_v30 = vmax.f32 %v211_v28, 0.0 }
  0xc9   :  { %359 = vmatmul.f32.vlgmr.msra.gmra.mxu1 %v331_v30  ;;  %391 = vmatmul.f32.vlgmr.msra.gmra.mxu2 %v331_v30 }
  0xca   :  { %423 = vmatmul.f32.vlgmr.msra.gmra.mxu3 %v331_v30  ;;  %566 = vmatpush.msra.mxu1 %v2095_v5  ;;  %v2312_v30 = vld [vmem:[#allocation11 + $0x18] sm:$0xff] }
  0xcb   :  { %627 = vmatpush.msra.mxu2 %v2248_v55  ;;  %532 = vmatpush.msrb.mxu3 %v2312_v30 }
  0xcc   :  { %v213_v37 = vpop.f32.mrf.mxu0  ;;  %567 = vmatpush.msra.mxu1 %v2098_v6 }
  0xcd   :  { %v214_v39 = vadd.f32 %v2154_v23, %v213_v37  ;;  %628 = vmatpush.msra.mxu2 %v2255_v57  ;;  %v2320_v37 = vld [vmem:[%s3062_s4] sm:$0x7] }
  0xce   :  { %568 = vmatpush.msra.mxu1 %v2100_v7 }
  0xcf   :  { %v332_v41 = vmax.f32 %v214_v39, 0.0  ;;  %629 = vmatpush.msra.mxu2 %v2259_v58  ;;  %v2322_v39 = vld [vmem:[#allocation11 + $0x10] sm:$0xff] }
  0xd0   :  { %569 = vmatpush.msra.mxu1 %v2104_v8  ;;  %533 = vmatpush.msrb.mxu3 %v2322_v39 }
  0xd1   :  { %362 = vmatmul.f32.gmra.mxu1 %v332_v41  ;;  %394 = vmatmul.f32.gmra.mxu2 %v332_v41 }
  0xd2   :  { %426 = vmatmul.f32.gmra.mxu3 %v332_v41  ;;  %570 = vmatpush.msra.mxu1 %v2109_v10  ;;  %v2326_v41 = vperm.slane %v2320_v37, 1 }
  0xd3   :  { %630 = vmatpush.msra.mxu2 %v2266_v60 }
  0xd4   :  { %v216_v44 = vpop.f32.mrf.mxu0  ;;  %571 = vmatpush.msra.mxu1 %v2121_v13  ;;  %3151 = vst [vmem:[#allocation35_spill] sm:$0xff] %v2326_v41 }
  0xd5   :  { %v217_v45 = vadd.f32 %v2154_v23, %v216_v44  ;;  %631 = vmatpush.msra.mxu2 %v2271_v61  ;;  %v2330_v44 = vld [vmem:[#allocation11 + $0x8] sm:$0xff] }
  0xd6   :  { %572 = vmatpush.msra.mxu1 %v2125_v15  ;;  %534 = vmatpush.msrb.mxu3 %v2330_v44 }
  0xd7   :  { %v333_v46 = vmax.f32 %v217_v45, 0.0  ;;  %632 = vmatpush.msra.mxu2 %v2276_v62  ;;  %v2335_v45 = vld [vmem:[#allocation11] sm:$0xff] }
  0xd8   :  { %573 = vmatpush.msra.mxu1 %v2134_v17  ;;  %535 = vmatpush.msrb.mxu3 %v2335_v45 }
  0xd9   :  { %365 = vmatmul.f32.gmra.mxu1 %v333_v46  ;;  %397 = vmatmul.f32.gmra.mxu2 %v333_v46 }
  0xda   :  { %429 = vmatmul.f32.gmra.mxu3 %v333_v46  ;;  %574 = vmatpush.msra.mxu1 %v2145_v20 }
  0xdb   :  { %633 = vmatpush.msra.mxu2 %v2281_v63  ;;  %653 = vmatpush.msra.mxu3 %v2106_v9 }
  0xdc   :  { %v219_v47 = vpop.f32.mrf.mxu0  ;;  %575 = vmatpush.msra.mxu1 %v2150_v22 }
  0xdd   :  { %v220_v48 = vadd.f32 %v2154_v23, %v219_v47  ;;  %634 = vmatpush.msra.mxu2 %v2288_v1  ;;  %654 = vmatpush.msra.mxu3 %v2113_v11 }
  0xde   :  { %576 = vmatpush.msra.mxu1 %v2161_v25 }
  0xdf   :  { %v334_v49 = vmax.f32 %v220_v48, 0.0  ;;  %635 = vmatpush.msra.mxu2 %v2292_v2  ;;  %655 = vmatpush.msra.mxu3 %v2118_v12 }
  0xe0   :  { %577 = vmatpush.msra.mxu1 %v2173_v31 }
  0xe1   :  { %368 = vmatmul.f32.gmra.mxu1 %v334_v49  ;;  %400 = vmatmul.f32.gmra.mxu2 %v334_v49 }
  0xe2   :  { %432 = vmatmul.f32.gmra.mxu3 %v334_v49  ;;  %578 = vmatpush.msra.mxu1 %v2176_v32  ;;  %v170_v49 = vld [vmem:[#allocation2 + $0x28] sm:$0xff] }
  0xe3   :  { %636 = vmatpush.msra.mxu2 %v2295_v3  ;;  %224 = vmatmul.f32.gmra.mxu0 %v170_v49 }
  0xe4   :  { %v222_v50 = vpop.f32.mrf.mxu0  ;;  %579 = vmatpush.msra.mxu1 %v2185_v35  ;;  %656 = vmatpush.msra.mxu3 %v2123_v14 }
  0xe5   :  { %v223_v51 = vadd.f32 %v2154_v23, %v222_v50  ;;  %637 = vmatpush.msra.mxu2 %v2300_v4 }
  0xe6   :  { %580 = vmatpush.msra.mxu1 %v2188_v36  ;;  %657 = vmatpush.msra.mxu3 %v2132_v16 }
  0xe7   :  { %v335_v52 = vmax.f32 %v223_v51, 0.0  ;;  %638 = vmatpush.msra.mxu2 %v2305_v26  ;;  %v171_v51 = vld [vmem:[#allocation2 + $0x30] sm:$0xff] }
  0xe8   :  { %581 = vmatpush.msra.mxu1 %v2196_v40  ;;  %658 = vmatpush.msra.mxu3 %v2139_v18 }
  0xe9   :  { %371 = vmatmul.f32.gmra.mxu1 %v335_v52  ;;  %403 = vmatmul.f32.gmra.mxu2 %v335_v52 }
  0xea   :  { %435 = vmatmul.f32.gmra.mxu3 %v335_v52  ;;  %639 = vmatpush.msra.mxu2 %v2312_v30 }
  0xeb   :  { %227 = vmatmul.f32.gmra.mxu0 %v171_v51  ;;  %659 = vmatpush.msra.mxu3 %v2143_v19 }
  0xec   :  { %640 = vmatpush.msra.mxu2 %v2322_v39 }
  0xed   :  { %660 = vmatpush.msra.mxu3 %v2148_v21 }
  0xee   :  { %641 = vmatpush.msra.mxu2 %v2330_v44 }
  0xef   :  { %661 = vmatpush.msra.mxu3 %v2159_v24 }
  0xf0   :  { %642 = vmatpush.msra.mxu2 %v2335_v45 }
  0xf1   :  { %455 = vmatmul.f32.vlgmr.msrb.gmra.mxu1 %v1988_v53  ;;  %475 = vmatmul.f32.vlgmr.msrb.gmra.mxu2 %v1988_v53 }
  0xf2   :  { %734 = vmatpush.msrb.mxu1 %v2248_v55  ;;  %760 = vmatpush.msrb.mxu2 %v2106_v9 }
  0xf3   :  { %662 = vmatpush.msra.mxu3 %v2166_v27 }
  0xf4   :  { %735 = vmatpush.msrb.mxu1 %v2255_v57  ;;  %761 = vmatpush.msrb.mxu2 %v2113_v11 }
  0xf5   :  { %663 = vmatpush.msra.mxu3 %v2171_v29 }
  0xf6   :  { %736 = vmatpush.msrb.mxu1 %v2259_v58  ;;  %762 = vmatpush.msrb.mxu2 %v2118_v12 }
  0xf7   :  { %664 = vmatpush.msra.mxu3 %v2180_v33 }
  0xf8   :  { %737 = vmatpush.msrb.mxu1 %v2266_v60  ;;  %763 = vmatpush.msrb.mxu2 %v2123_v14 }
  0xf9   :  { %665 = vmatpush.msra.mxu3 %v2183_v34 }
  0xfa   :  { %738 = vmatpush.msrb.mxu1 %v2271_v61  ;;  %764 = vmatpush.msrb.mxu2 %v2132_v16 }
  0xfb   :  { %666 = vmatpush.msra.mxu3 %v2192_v38 }
  0xfc   :  { %739 = vmatpush.msrb.mxu1 %v2276_v62  ;;  %765 = vmatpush.msrb.mxu2 %v2139_v18 }
  0xfd   :  { %667 = vmatpush.msra.mxu3 %v2201_v42 }
  0xfe   :  { %740 = vmatpush.msrb.mxu1 %v2281_v63  ;;  %766 = vmatpush.msrb.mxu2 %v2143_v19 }
  0xff   :  { %668 = vmatpush.msra.mxu3 %v2205_v43 }
 0x100   :  { %741 = vmatpush.msrb.mxu1 %v2288_v1  ;;  %767 = vmatpush.msrb.mxu2 %v2148_v21 }
 0x102   :  { %742 = vmatpush.msrb.mxu1 %v2292_v2  ;;  %768 = vmatpush.msrb.mxu2 %v2159_v24 }
 0x104   :  { %743 = vmatpush.msrb.mxu1 %v2295_v3  ;;  %769 = vmatpush.msrb.mxu2 %v2166_v27 }
 0x106   :  { %744 = vmatpush.msrb.mxu1 %v2300_v4  ;;  %770 = vmatpush.msrb.mxu2 %v2171_v29 }
 0x108   :  { %745 = vmatpush.msrb.mxu1 %v2305_v26  ;;  %771 = vmatpush.msrb.mxu2 %v2180_v33 }
 0x10a   :  { %746 = vmatpush.msrb.mxu1 %v2312_v30  ;;  %772 = vmatpush.msrb.mxu2 %v2183_v34 }
 0x10c   :  { %747 = vmatpush.msrb.mxu1 %v2322_v39  ;;  %773 = vmatpush.msrb.mxu2 %v2192_v38 }
 0x10e   :  { %748 = vmatpush.msrb.mxu1 %v2330_v44  ;;  %774 = vmatpush.msrb.mxu2 %v2201_v42 }
 0x110   :  { %749 = vmatpush.msrb.mxu1 %v2335_v45  ;;  %775 = vmatpush.msrb.mxu2 %v2205_v43 }
 0x14c   :  { %v2246_v54 = vpop.f32.mrf.mxu2 }
 0x14d   :  { %v393_v46 = vadd.f32 %v2246_v54, %v2326_v41 }
 0x154   :  { %v2253_v56 = vpop.f32.mrf.mxu2 }
 0x15c   :  { %v2264_v59 = vpop.f32.mrf.mxu2 }
 0x15d   :  { %3148 = vst [vmem:[#allocation32_spill] sm:$0xff] %v2264_v59 }
 0x164   :  { %v2286_v0 = vpop.f32.mrf.mxu2 }
 0x165   :  { %3149 = vst [vmem:[#allocation33_spill] sm:$0xff] %v2286_v0 }
 0x16c   :  { %v2310_v28 = vpop.f32.mrf.mxu2 }
 0x16d   :  { %3150 = vst [vmem:[#allocation34_spill] sm:$0xff] %v2310_v28 }
 0x174   :  { %v476_v47 = vpop.f32.mrf.mxu2 }
 0x175   :  { %v499_v48 = vadd.f32 %v476_v47, %v393_v46 }
 0x177   :  { %v1521_v50 = vmul.f32 -1.442695, %v499_v48 }
 0x179   :  { %1554 = vpow2.f32 %v1521_v50 }
 0x17f   :  { %v1555_v52 = vpop.eup %1554 }
 0x180   :  { %v503_v53 = vadd.f32 1.0, %v1555_v52 }
 0x182   :  { %1556 = vrcp.f32 %v503_v53  ;;  %v515_v48 = vand.u32 2147483648, %v503_v53  ;;  %v513_v50 = vand.u32 2147483647, %v503_v53  ;;  %vm509_vm1 = vweird.f32 %v503_v53 }
 0x184   :  { %v516_v52 = vor.u32 1.1754944e-38, %v515_v48  ;;  %vm514_vm3 = vcmp.eq.f32.partialorder %v513_v50, 8.507059e+37  ;;  %v2403_v50 = vperm.slane %v2320_v37, 0 }
 0x186   :  { %3156 = vst [vmem:[#allocation40_spill] sm:$0xff] %v2403_v50 }
 0x188   :  { %v1557_v54 = vpop.eup %1556 }
 0x189   :  { %v505_v46 = vmul.f32 %v1557_v54, %v503_v53  ;;  %vm510_vm0 = vweird.f32 %v1557_v54 }
 0x18a   :  { %vm511_vm2 = vmor %vm509_vm1, %vm510_vm0 }
 0x18b   :  { %v506_v47 = vsub.f32 1.0, %v505_v46 }
 0x18d   :  { %v507_v49 = vmul.f32 %v1557_v54, %v506_v47 }
 0x18f   :  { %v508_v51 = vadd.f32 %v1557_v54, %v507_v49 }
 0x191   :  { %v512_v46 = vsel %vm511_vm2, %v1557_v54, %v508_v51 }
 0x192   :  { %v517_v28 = vsel %vm514_vm3, %v516_v52, %v512_v46  ;;  %v424_v46 = vpop.f32.mrf.mxu3 }
 0x193   :  { %v519_v47 = vmul.f32 0.0, %v517_v28  ;;  %v360_v28 = vpop.f32.mrf.mxu1 }
 0x194   :  { %v361_v52 = vadd.f32 %v360_v28, %v2403_v50 }
 0x195   :  { %536 = vmatmul.f32.vlgmr.msrb.gmra.mxu3 %v519_v47 }
 0x196   :  { %780 = vmatpush.msrb.mxu3 %v2095_v5 }
 0x198   :  { %781 = vmatpush.msrb.mxu3 %v2098_v6 }
 0x19a   :  { %782 = vmatpush.msrb.mxu3 %v2100_v7  ;;  %v2406_v59 = vpop.f32.mrf.mxu3 }
 0x19b   :  { %v2394_v53 = vpop.f32.mrf.mxu1  ;;  %3157 = vst [vmem:[#allocation41_spill] sm:$0xff] %v2406_v59 }
 0x19c   :  { %783 = vmatpush.msrb.mxu3 %v2104_v8  ;;  %3152 = vst [vmem:[#allocation36_spill] sm:$0xff] %v2394_v53 }
 0x19e   :  { %784 = vmatpush.msrb.mxu3 %v2109_v10 }
 0x1a0   :  { %785 = vmatpush.msrb.mxu3 %v2121_v13 }
 0x1a2   :  { %786 = vmatpush.msrb.mxu3 %v2125_v15 }
 0x1a3   :  { %v2396_v54 = vpop.f32.mrf.mxu1 }
 0x1a4   :  { %787 = vmatpush.msrb.mxu3 %v2134_v17  ;;  %3153 = vst [vmem:[#allocation37_spill] sm:$0xff] %v2396_v54  ;;  %v172_v54 = vld [vmem:[#allocation2 + $0x38] sm:$0xff] }
 0x1a5   :  { %230 = vmatmul.f32.gmra.mxu0 %v172_v54 }
 0x1a6   :  { %788 = vmatpush.msrb.mxu3 %v2145_v20 }
 0x1a8   :  { %789 = vmatpush.msrb.mxu3 %v2150_v22 }
 0x1aa   :  { %790 = vmatpush.msrb.mxu3 %v2161_v25 }
 0x1ab   :  { %v2398_v48 = vpop.f32.mrf.mxu1 }
 0x1ac   :  { %791 = vmatpush.msrb.mxu3 %v2173_v31  ;;  %3154 = vst [vmem:[#allocation38_spill] sm:$0xff] %v2398_v48 }
 0x1ae   :  { %792 = vmatpush.msrb.mxu3 %v2176_v32 }
 0x1b0   :  { %793 = vmatpush.msrb.mxu3 %v2185_v35  ;;  %v225_v35 = vpop.f32.mrf.mxu0 }
 0x1b1   :  { %v226_v32 = vadd.f32 %v2154_v23, %v225_v35 }
 0x1b2   :  { %794 = vmatpush.msrb.mxu3 %v2188_v36  ;;  %v2408_v36 = vpop.f32.mrf.mxu3 }
 0x1b3   :  { %v2400_v49 = vpop.f32.mrf.mxu1  ;;  %3158 = vst [vmem:[#allocation42_spill] sm:$0xff] %v2408_v36  ;;  %v2417_v36 = vperm.slane %v2320_v37, 2 }
 0x1b4   :  { %795 = vmatpush.msrb.mxu3 %v2196_v40  ;;  %3155 = vst [vmem:[#allocation39_spill] sm:$0xff] %v2400_v49 }
 0x1b5   :  { %1476 = vst [vmem:[#allocation17] sm:$0xff] %v226_v32  ;;  %v425_v35 = vadd.f32 %v424_v46, %v2417_v36 }
 0x1b6   :  { %3161 = vst [vmem:[#allocation45_spill] sm:$0xff] %v2417_v36 }
 0x1ba   :  { %v2410_v48 = vpop.f32.mrf.mxu3 }
 0x1bb   :  { %v456_v51 = vpop.f32.mrf.mxu1  ;;  %3159 = vst [vmem:[#allocation43_spill] sm:$0xff] %v2410_v48 }
 0x1bc   :  { %v479_v47 = vadd.f32 %v456_v51, %v361_v52  ;;  %v228_v52 = vpop.f32.mrf.mxu0 }
 0x1be   :  { %v1520_v0 = vmul.f32 -1.442695, %v479_v47  ;;  %v229_v47 = vadd.f32 %v2154_v23, %v228_v52 }
 0x1c0   :  { %1558 = vpow2.f32 %v1520_v0  ;;  %1477 = vst [vmem:[#allocation17 + $0x8] sm:$0xff] %v229_v47 }
 0x1c2   :  { %v2414_v0 = vpop.f32.mrf.mxu3 }
 0x1c3   :  { %3160 = vst [vmem:[#allocation44_spill] sm:$0xff] %v2414_v0 }
 0x1c6   :  { %v1559_v40 = vpop.eup %1558 }
 0x1c7   :  { %v483_v53 = vadd.f32 1.0, %v1559_v40 }
 0x1c9   :  { %1560 = vrcp.f32 %v483_v53  ;;  %v495_v59 = vand.u32 2147483648, %v483_v53  ;;  %vm489_vm5 = vweird.f32 %v483_v53  ;;  %v493_v48 = vand.u32 2147483647, %v483_v53 }
 0x1cb   :  { %v496_v50 = vor.u32 1.1754944e-38, %v495_v59  ;;  %vm494_vm7 = vcmp.eq.f32.partialorder %v493_v48, 8.507059e+37  ;;  %v3162_v59 = vld [vmem:[#allocation26_spill] sm:$0xff] }
 0x1cf   :  { %v1561_v49 = vpop.eup %1560 }
 0x1d0   :  { %v485_v28 = vmul.f32 %v1561_v49, %v483_v53  ;;  %vm490_vm4 = vweird.f32 %v1561_v49  ;;  %v3169_v53 = vld [vmem:[#allocation36_spill] sm:$0xff] }
 0x1d1   :  { %vm491_vm6 = vmor %vm489_vm5, %vm490_vm4 }
 0x1d2   :  { %v486_v51 = vsub.f32 1.0, %v485_v28 }
 0x1d4   :  { %v487_v40 = vmul.f32 %v1561_v49, %v486_v51 }
 0x1d6   :  { %v488_v54 = vadd.f32 %v1561_v49, %v487_v40 }
 0x1d8   :  { %v492_v32 = vsel %vm491_vm6, %v1561_v49, %v488_v54 }
 0x1d9   :  { %v497_v52 = vsel %vm494_vm7, %v496_v50, %v492_v32 }
 0x1da   :  { %v542_v51 = vsub.f32 1.0, %v497_v52 }
 0x1dc   :  { %v543_v37 = vmul.f32 0.0, %v542_v51 }
 0x218   :  { %v537_v28 = vpop.f32.mrf.mxu3 }
 0x219   :  { %v540_v31 = vadd.f32 %v537_v28, %v425_v35  ;;  %v3170_v28 = vld [vmem:[#allocation41_spill] sm:$0xff] }
 0x21b   :  { %1562 = vtanh.f32 %v540_v31 }
 0x221   :  { %v1563_v47 = vpop.eup %1562 }
 0x222   :  { %v544_v0 = vmul.f32 %v1563_v47, %v497_v52  ;;  %v428_v52 = vadd.f32 %v3170_v28, %v2417_v36 }
 0x224   :  { %v2420_v25 = vadd.f32 %v544_v0, %v543_v37 }
 0x226   :  { %562 = vmatmul.f32.vlgmr.msrb.gmra.mxu0 %v2420_v25  ;;  %582 = vmatmul.f32.vlgmr.msra.gmra.mxu1 %v2420_v25 }
 0x227   :  { %841 = vmatpush.msrb.mxu0 %v2248_v55  ;;  %867 = vmatpush.msra.mxu1 %v2106_v9  ;;  %v231_v9 = vpop.f32.mrf.mxu0 }
 0x229   :  { %842 = vmatpush.msrb.mxu0 %v2255_v57  ;;  %868 = vmatpush.msra.mxu1 %v2113_v11  ;;  %v232_v11 = vadd.f32 %v2154_v23, %v231_v9 }
 0x22b   :  { %843 = vmatpush.msrb.mxu0 %v2259_v58  ;;  %869 = vmatpush.msra.mxu1 %v2118_v12  ;;  %1478 = vst [vmem:[#allocation17 + $0x10] sm:$0xff] %v232_v11  ;;  %v396_v12 = vadd.f32 %v2253_v56, %v2326_v41 }
 0x22d   :  { %844 = vmatpush.msrb.mxu0 %v2266_v60  ;;  %870 = vmatpush.msra.mxu1 %v2123_v14 }
 0x22f   :  { %845 = vmatpush.msrb.mxu0 %v2271_v61  ;;  %871 = vmatpush.msra.mxu1 %v2132_v16 }
 0x231   :  { %846 = vmatpush.msrb.mxu0 %v2276_v62  ;;  %872 = vmatpush.msra.mxu1 %v2139_v18 }
 0x233   :  { %847 = vmatpush.msrb.mxu0 %v2281_v63  ;;  %873 = vmatpush.msra.mxu1 %v2143_v19 }
 0x235   :  { %848 = vmatpush.msrb.mxu0 %v2288_v1  ;;  %874 = vmatpush.msra.mxu1 %v2148_v21 }
 0x237   :  { %849 = vmatpush.msrb.mxu0 %v2292_v2  ;;  %875 = vmatpush.msra.mxu1 %v2159_v24 }
 0x239   :  { %850 = vmatpush.msrb.mxu0 %v2295_v3  ;;  %876 = vmatpush.msra.mxu1 %v2166_v27 }
 0x23b   :  { %851 = vmatpush.msrb.mxu0 %v2300_v4  ;;  %877 = vmatpush.msra.mxu1 %v2171_v29 }
 0x23d   :  { %852 = vmatpush.msrb.mxu0 %v2305_v26  ;;  %878 = vmatpush.msra.mxu1 %v2180_v33 }
 0x23f   :  { %853 = vmatpush.msrb.mxu0 %v2312_v30  ;;  %879 = vmatpush.msra.mxu1 %v2183_v34 }
 0x241   :  { %854 = vmatpush.msrb.mxu0 %v2322_v39  ;;  %880 = vmatpush.msra.mxu1 %v2192_v38 }
 0x243   :  { %855 = vmatpush.msrb.mxu0 %v2330_v44  ;;  %881 = vmatpush.msra.mxu1 %v2201_v42 }
 0x245   :  { %856 = vmatpush.msrb.mxu0 %v2335_v45  ;;  %882 = vmatpush.msra.mxu1 %v2205_v43 }
 0x2a3   :  { %v583_v14 = vpop.f32.mrf.mxu1 }
 0x2a4   :  { %v606_v16 = vadd.f32 %v583_v14, %v396_v12 }
 0x2a6   :  { %v1523_v18 = vmul.f32 -1.442695, %v606_v16 }
 0x2a8   :  { %1564 = vpow2.f32 %v1523_v18 }
 0x2ae   :  { %v1565_v19 = vpop.eup %1564 }
 0x2af   :  { %v610_v21 = vadd.f32 1.0, %v1565_v19 }
 0x2b1   :  { %1566 = vrcp.f32 %v610_v21  ;;  %v622_v31 = vand.u32 2147483648, %v610_v21  ;;  %v620_v34 = vand.u32 2147483647, %v610_v21  ;;  %vm616_vm9 = vweird.f32 %v610_v21 }
 0x2b3   :  { %v623_v23 = vor.u32 1.1754944e-38, %v622_v31  ;;  %vm621_vm11 = vcmp.eq.f32.partialorder %v620_v34, 8.507059e+37 }
 0x2b7   :  { %v1567_v24 = vpop.eup %1566 }
 0x2b8   :  { %v612_v27 = vmul.f32 %v1567_v24, %v610_v21  ;;  %vm617_vm8 = vweird.f32 %v1567_v24 }
 0x2b9   :  { %vm618_vm10 = vmor %vm616_vm9, %vm617_vm8 }
 0x2ba   :  { %v613_v29 = vsub.f32 1.0, %v612_v27 }
 0x2bc   :  { %v614_v33 = vmul.f32 %v1567_v24, %v613_v29 }
 0x2be   :  { %v615_v38 = vadd.f32 %v1567_v24, %v614_v33 }
 0x2c0   :  { %v619_v42 = vsel %vm618_vm10, %v1567_v24, %v615_v38 }
 0x2c1   :  { %v624_v43 = vsel %vm621_vm11, %v623_v23, %v619_v42 }
 0x2c2   :  { %v626_v56 = vmul.f32 %v624_v43, %v2420_v25 }
 0x2c4   :  { %643 = vmatmul.f32.vlgmr.msra.gmra.mxu2 %v626_v56 }
 0x2c5   :  { %887 = vmatpush.msra.mxu2 %v2095_v5  ;;  %v3163_v5 = vld [vmem:[#allocation27_spill] sm:$0xff] }
 0x2c7   :  { %888 = vmatpush.msra.mxu2 %v2098_v6  ;;  %v3164_v6 = vld [vmem:[#allocation28_spill] sm:$0xff] }
 0x2c9   :  { %889 = vmatpush.msra.mxu2 %v2100_v7  ;;  %v3165_v7 = vld [vmem:[#allocation29_spill] sm:$0xff] }
 0x2cb   :  { %890 = vmatpush.msra.mxu2 %v2104_v8  ;;  %v3166_v8 = vld [vmem:[#allocation30_spill] sm:$0xff] }
 0x2cd   :  { %891 = vmatpush.msra.mxu2 %v2109_v10  ;;  %v3167_v10 = vld [vmem:[#allocation31_spill] sm:$0xff] }
 0x2cf   :  { %892 = vmatpush.msra.mxu2 %v2121_v13  ;;  %v563_v13 = vpop.f32.mrf.mxu0 }
 0x2d1   :  { %893 = vmatpush.msra.mxu2 %v2125_v15  ;;  %v3168_v15 = vld [vmem:[#allocation40_spill] sm:$0xff] }
 0x2d3   :  { %894 = vmatpush.msra.mxu2 %v2134_v17  ;;  %v364_v17 = vadd.f32 %v3169_v53, %v3168_v15 }
 0x2d5   :  { %895 = vmatpush.msra.mxu2 %v2145_v20  ;;  %v586_v48 = vadd.f32 %v563_v13, %v364_v17 }
 0x2d7   :  { %896 = vmatpush.msra.mxu2 %v2150_v22  ;;  %v1522_v20 = vmul.f32 -1.442695, %v586_v48 }
 0x2d9   :  { %897 = vmatpush.msra.mxu2 %v3162_v59  ;;  %1568 = vpow2.f32 %v1522_v20 }
 0x2db   :  { %898 = vmatpush.msra.mxu2 %v3163_v5  ;;  %v3172_v5 = vld [vmem:[#allocation37_spill] sm:$0xff] }
 0x2dd   :  { %899 = vmatpush.msra.mxu2 %v3164_v6  ;;  %v367_v6 = vadd.f32 %v3172_v5, %v3168_v15  ;;  %v2588_v5 = vld [vmem:[#allocation8 + $0x50] sm:$0xff] }
 0x2df   :  { %900 = vmatpush.msra.mxu2 %v3165_v7  ;;  %v1569_v22 = vpop.eup %1568 }
 0x2e0   :  { %v590_v49 = vadd.f32 1.0, %v1569_v22 }
 0x2e1   :  { %901 = vmatpush.msra.mxu2 %v3166_v8 }
 0x2e2   :  { %1570 = vrcp.f32 %v590_v49  ;;  %v602_v35 = vand.u32 2147483648, %v590_v49  ;;  %vm596_vm13 = vweird.f32 %v590_v49  ;;  %v600_v32 = vand.u32 2147483647, %v590_v49 }
 0x2e3   :  { %902 = vmatpush.msra.mxu2 %v3167_v10 }
 0x2e4   :  { %v603_v37 = vor.u32 1.1754944e-38, %v602_v35  ;;  %vm601_vm15 = vcmp.eq.f32.partialorder %v600_v32, 8.507059e+37 }
 0x2e8   :  { %v1571_v50 = vpop.eup %1570 }
 0x2e9   :  { %v592_v46 = vmul.f32 %v1571_v50, %v590_v49  ;;  %vm597_vm12 = vweird.f32 %v1571_v50 }
 0x2ea   :  { %vm598_vm14 = vmor %vm596_vm13, %vm597_vm12 }
 0x2eb   :  { %v593_v0 = vsub.f32 1.0, %v592_v46  ;;  %v3173_v46 = vld [vmem:[#allocation42_spill] sm:$0xff] }
 0x2ec   :  { %3184 = vst [vmem:[#allocation42_spill] sm:$0xff] %v2588_v5 }
 0x2ed   :  { %v594_v40 = vmul.f32 %v1571_v50, %v593_v0  ;;  %v431_v0 = vadd.f32 %v3173_v46, %v2417_v36 }
 0x2ef   :  { %v595_v54 = vadd.f32 %v1571_v50, %v594_v40 }
 0x2f1   :  { %v599_v51 = vsel %vm598_vm14, %v1571_v50, %v595_v54 }
 0x2f2   :  { %v604_v11 = vsel %vm601_vm15, %v603_v37, %v599_v51 }
 0x2f3   :  { %v649_v12 = vsub.f32 1.0, %v604_v11 }
 0x2f5   :  { %v650_v18 = vmul.f32 %v649_v12, %v2420_v25  ;;  %v3171_v25 = vld [vmem:[#allocation32_spill] sm:$0xff]  ;;  %v2516_v12 = vld [vmem:[#allocation8 + $0x170] sm:$0xff] }
 0x347   :  { %v644_v47 = vpop.f32.mrf.mxu2 }
 0x348   :  { %v647_v9 = vadd.f32 %v644_v47, %v428_v52 }
 0x34a   :  { %1572 = vtanh.f32 %v647_v9 }
 0x350   :  { %v1573_v14 = vpop.eup %1572 }
 0x351   :  { %v651_v16 = vmul.f32 %v1573_v14, %v604_v11  ;;  %v2513_v11 = vld [vmem:[#allocation8 + $0x168] sm:$0xff]  ;;  %v2519_v14 = vld [vmem:[#allocation8 + $0x150] sm:$0xff] }
 0x353   :  { %v2481_v19 = vadd.f32 %v651_v16, %v650_v18  ;;  %v2522_v16 = vld [vmem:[#allocation8 + $0x158] sm:$0xff] }
 0x354   :  { %v2525_v18 = vld [vmem:[#allocation8 + $0x138] sm:$0xff] }
 0x355   :  { %669 = vmatmul.f32.vlgmr.msra.gmra.mxu3 %v2481_v19  ;;  %689 = vmatmul.f32.vlgmr.msra.gmra.mxu0 %v2481_v19 }
 0x356   :  { %948 = vmatpush.msra.mxu3 %v2248_v55  ;;  %v399_v55 = vadd.f32 %v3171_v25, %v2326_v41  ;;  %v2531_v25 = vld [vmem:[#allocation8 + $0x120] sm:$0xff] }
 0x358   :  { %949 = vmatpush.msra.mxu3 %v2255_v57 }
 0x35a   :  { %950 = vmatpush.msra.mxu3 %v2259_v58 }
 0x35c   :  { %951 = vmatpush.msra.mxu3 %v2266_v60 }
 0x35e   :  { %952 = vmatpush.msra.mxu3 %v2271_v61 }
 0x360   :  { %953 = vmatpush.msra.mxu3 %v2276_v62 }
 0x362   :  { %954 = vmatpush.msra.mxu3 %v2281_v63 }
 0x364   :  { %955 = vmatpush.msra.mxu3 %v2288_v1 }
 0x366   :  { %956 = vmatpush.msra.mxu3 %v2292_v2 }
 0x368   :  { %957 = vmatpush.msra.mxu3 %v2295_v3 }
 0x36a   :  { %958 = vmatpush.msra.mxu3 %v2300_v4 }
 0x36c   :  { %959 = vmatpush.msra.mxu3 %v2305_v26 }
 0x36e   :  { %960 = vmatpush.msra.mxu3 %v2312_v30 }
 0x370   :  { %961 = vmatpush.msra.mxu3 %v2322_v39 }
 0x372   :  { %962 = vmatpush.msra.mxu3 %v2330_v44 }
 0x374   :  { %963 = vmatpush.msra.mxu3 %v2335_v45 }
 0x3d2   :  { %v690_v57 = vpop.f32.mrf.mxu0 }
 0x3d3   :  { %v713_v58 = vadd.f32 %v690_v57, %v399_v55  ;;  %v2534_v55 = vld [vmem:[#allocation8 + $0x128] sm:$0xff] }
 0x3d4   :  { %v2537_v57 = vld [vmem:[#allocation8 + $0x108] sm:$0xff] }
 0x3d5   :  { %v1525_v60 = vmul.f32 -1.442695, %v713_v58  ;;  %v2540_v58 = vld [vmem:[#allocation8 + $0x110] sm:$0xff] }
 0x3d7   :  { %1574 = vpow2.f32 %v1525_v60  ;;  %v2543_v60 = vld [vmem:[#allocation8 + $0xf0] sm:$0xff] }
 0x3d8   :  { %v670_v59 = vpop.f32.mrf.mxu3 }
 0x3d9   :  { %v693_v7 = vadd.f32 %v670_v59, %v367_v6  ;;  %v2585_v59 = vld [vmem:[#allocation8 + $0x48] sm:$0xff]  ;;  %v2591_v6 = vld [vmem:[#allocation8 + $0x30] sm:$0xff] }
 0x3da   :  { %3183 = vst [vmem:[#allocation37_spill] sm:$0xff] %v2585_v59 }
 0x3db   :  { %v1524_v8 = vmul.f32 -1.442695, %v693_v7  ;;  %3185 = vst [vmem:[#allocation46_spill] sm:$0xff] %v2591_v6  ;;  %v2594_v7 = vld [vmem:[#allocation8 + $0x38] sm:$0xff] }
 0x3dc   :  { %3186 = vst [vmem:[#allocation47_spill] sm:$0xff] %v2594_v7 }
 0x3dd   :  { %v1575_v61 = vpop.eup %1574 }
 0x3de   :  { %v717_v21 = vadd.f32 1.0, %v1575_v61  ;;  %v2546_v61 = vld [vmem:[#allocation8 + $0xf8] sm:$0xff] }
 0x3e0   :  { %1576 = vrcp.f32 %v717_v21  ;;  %v729_v31 = vand.u32 2147483648, %v717_v21  ;;  %v727_v34 = vand.u32 2147483647, %v717_v21  ;;  %vm723_vm1 = vweird.f32 %v717_v21 }
 0x3e1   :  { %1578 = vpow2.f32 %v1524_v8  ;;  %v2597_v8 = vld [vmem:[#allocation8 + $0x18] sm:$0xff] }
 0x3e2   :  { %v730_v23 = vor.u32 1.1754944e-38, %v729_v31  ;;  %vm728_vm3 = vcmp.eq.f32.partialorder %v727_v34, 8.507059e+37  ;;  %v2561_v31 = vld [vmem:[#allocation8 + $0xa8] sm:$0xff]  ;;  %v2567_v34 = vld [vmem:[#allocation8 + $0x90] sm:$0xff]  ;;  %3187 = vst [vmem:[#allocation48_spill] sm:$0xff] %v2597_v8 }
 0x3e3   :  { %3175 = vst [vmem:[#allocation27_spill] sm:$0xff] %v2561_v31 }
 0x3e4   :  { %3177 = vst [vmem:[#allocation29_spill] sm:$0xff] %v2567_v34 }
 0x3e6   :  { %v1577_v24 = vpop.eup %1576 }
 0x3e7   :  { %v719_v27 = vmul.f32 %v1577_v24, %v717_v21  ;;  %vm724_vm0 = vweird.f32 %v1577_v24  ;;  %v1579_v10 = vpop.eup %1578  ;;  %v2549_v21 = vld [vmem:[#allocation8 + $0xd8] sm:$0xff] }
 0x3e8   :  { %vm725_vm2 = vmor %vm723_vm1, %vm724_vm0  ;;  %v697_v13 = vadd.f32 1.0, %v1579_v10  ;;  %v2600_v10 = vld [vmem:[#allocation8 + $0x20] sm:$0xff] }
 0x3e9   :  { %v720_v29 = vsub.f32 1.0, %v719_v27  ;;  %v2555_v27 = vld [vmem:[#allocation8 + $0xc0] sm:$0xff]  ;;  %3188 = vst [vmem:[#allocation49_spill] sm:$0xff] %v2600_v10 }
 0x3ea   :  { %1580 = vrcp.f32 %v697_v13  ;;  %v709_v49 = vand.u32 2147483648, %v697_v13  ;;  %vm703_vm5 = vweird.f32 %v697_v13  ;;  %v707_v50 = vand.u32 2147483647, %v697_v13 }
 0x3eb   :  { %v721_v33 = vmul.f32 %v1577_v24, %v720_v29  ;;  %v2558_v29 = vld [vmem:[#allocation8 + $0xc8] sm:$0xff] }
 0x3ec   :  { %v710_v35 = vor.u32 1.1754944e-38, %v709_v49  ;;  %vm708_vm7 = vcmp.eq.f32.partialorder %v707_v50, 8.507059e+37  ;;  %3174 = vst [vmem:[#allocation26_spill] sm:$0xff] %v2558_v29 }
 0x3ed   :  { %v722_v38 = vadd.f32 %v1577_v24, %v721_v33  ;;  %v2564_v33 = vld [vmem:[#allocation8 + $0xb0] sm:$0xff] }
 0x3ee   :  { %3176 = vst [vmem:[#allocation28_spill] sm:$0xff] %v2564_v33 }
 0x3ef   :  { %v726_v42 = vsel %vm725_vm2, %v1577_v24, %v722_v38  ;;  %v2552_v24 = vld [vmem:[#allocation8 + $0xe0] sm:$0xff]  ;;  %v2570_v38 = vld [vmem:[#allocation8 + $0x98] sm:$0xff] }
 0x3f0   :  { %v731_v43 = vsel %vm728_vm3, %v730_v23, %v726_v42  ;;  %v1581_v53 = vpop.eup %1580  ;;  %3178 = vst [vmem:[#allocation30_spill] sm:$0xff] %v2570_v38  ;;  %v2573_v23 = vld [vmem:[#allocation8 + $0x78] sm:$0xff]  ;;  %v2576_v42 = vld [vmem:[#allocation8 + $0x80] sm:$0xff] }
 0x3f1   :  { %v733_v56 = vmul.f32 %v731_v43, %v2481_v19  ;;  %v699_v17 = vmul.f32 %v1581_v53, %v697_v13  ;;  %vm704_vm4 = vweird.f32 %v1581_v53  ;;  %3179 = vst [vmem:[#allocation31_spill] sm:$0xff] %v2573_v23  ;;  %v2579_v43 = vld [vmem:[#allocation8 + $0x60] sm:$0xff] }
 0x3f2   :  { %vm705_vm6 = vmor %vm703_vm5, %vm704_vm4  ;;  %3180 = vst [vmem:[#allocation36_spill] sm:$0xff] %v2576_v42  ;;  %v2603_v13 = vld [vmem:[#allocation8] sm:$0xff] }
 0x3f3   :  { %750 = vmatmul.f32.vlgmr.msrb.gmra.mxu1 %v733_v56  ;;  %v700_v48 = vsub.f32 1.0, %v699_v17  ;;  %3181 = vst [vmem:[#allocation41_spill] sm:$0xff] %v2579_v43  ;;  %v2582_v56 = vld [vmem:[#allocation8 + $0x68] sm:$0xff] }
 0x3f4   :  { %3182 = vst [vmem:[#allocation32_spill] sm:$0xff] %v2582_v56  ;;  %v3191_v17 = vld [vmem:[#allocation33_spill] sm:$0xff] }
 0x3f5   :  { %v701_v20 = vmul.f32 %v1581_v53, %v700_v48  ;;  %3189 = vst [vmem:[#allocation50_spill] sm:$0xff] %v2603_v13  ;;  %v402_v48 = vadd.f32 %v3191_v17, %v2326_v41 }
 0x3f7   :  { %v702_v22 = vadd.f32 %v1581_v53, %v701_v20 }
 0x3f9   :  { %v706_v40 = vsel %vm705_vm6, %v1581_v53, %v702_v22  ;;  %v2606_v53 = vld [vmem:[#allocation8 + $0x8] sm:$0xff] }
 0x3fa   :  { %v711_v28 = vsel %vm708_vm7, %v710_v35, %v706_v40  ;;  %3190 = vst [vmem:[#allocation51_spill] sm:$0xff] %v2606_v53 }
 0x3fb   :  { %v756_v52 = vsub.f32 1.0, %v711_v28 }
 0x3fd   :  { %v757_v37 = vmul.f32 %v756_v52, %v2481_v19  ;;  %v2528_v19 = vld [vmem:[#allocation8 + $0x140] sm:$0xff] }
 0x470   :  { %v751_v54 = vpop.f32.mrf.mxu1 }
 0x471   :  { %v754_v32 = vadd.f32 %v751_v54, %v431_v0 }
 0x473   :  { %1582 = vtanh.f32 %v754_v32 }
 0x479   :  { %v1583_v51 = vpop.eup %1582 }
 0x47a   :  { %v758_v47 = vmul.f32 %v1583_v51, %v711_v28 }
 0x47c   :  { %v2509_v9 = vadd.f32 %v758_v47, %v757_v37 }
 0x47e   :  { %776 = vmatmul.f32.vlgmr.msrb.gmra.mxu2 %v2509_v9  ;;  %796 = vmatmul.f32.vlgmr.msrb.gmra.mxu3 %v2509_v9 }
 0x47f   :  { %1057 = vmatpush.msrb.mxu2 %v2513_v11  ;;  %1077 = vmatpush.msrb.mxu3 %v2516_v12 }
 0x481   :  { %1058 = vmatpush.msrb.mxu2 %v2519_v14  ;;  %1078 = vmatpush.msrb.mxu3 %v2522_v16 }
 0x483   :  { %1059 = vmatpush.msrb.mxu2 %v2525_v18  ;;  %1079 = vmatpush.msrb.mxu3 %v2528_v19 }
 0x485   :  { %1060 = vmatpush.msrb.mxu2 %v2531_v25  ;;  %1080 = vmatpush.msrb.mxu3 %v2534_v55 }
 0x487   :  { %1061 = vmatpush.msrb.mxu2 %v2537_v57  ;;  %1081 = vmatpush.msrb.mxu3 %v2540_v58 }
 0x489   :  { %1062 = vmatpush.msrb.mxu2 %v2543_v60  ;;  %1082 = vmatpush.msrb.mxu3 %v2546_v61 }
 0x48b   :  { %1063 = vmatpush.msrb.mxu2 %v2549_v21  ;;  %1083 = vmatpush.msrb.mxu3 %v2552_v24 }
 0x48d   :  { %1064 = vmatpush.msrb.mxu2 %v2555_v27  ;;  %1084 = vmatpush.msrb.mxu3 %v2558_v29  ;;  %v2859_v29 = vld [vmem:[#allocation8 + $0x10] sm:$0xff] }
 0x48e   :  { %3237 = vst [vmem:[#allocation86_spill] sm:$0xff] %v2859_v29 }
 0x48f   :  { %1065 = vmatpush.msrb.mxu2 %v2561_v31  ;;  %1085 = vmatpush.msrb.mxu3 %v2564_v33  ;;  %v2820_v33 = vld [vmem:[#allocation14 + $0x28] sm:$0xff] }
 0x491   :  { %1066 = vmatpush.msrb.mxu2 %v2567_v34  ;;  %1086 = vmatpush.msrb.mxu3 %v2570_v38 }
 0x493   :  { %1067 = vmatpush.msrb.mxu2 %v2573_v23  ;;  %1087 = vmatpush.msrb.mxu3 %v2576_v42  ;;  %v2813_v42 = vld [vmem:[#allocation8 + $0xb8] sm:$0xff] }
 0x494   :  { %3231 = vst [vmem:[#allocation82_spill] sm:$0xff] %v2813_v42 }
 0x495   :  { %1068 = vmatpush.msrb.mxu2 %v2579_v43  ;;  %1088 = vmatpush.msrb.mxu3 %v2582_v56  ;;  %v2811_v43 = vld [vmem:[#allocation14 + $0x30] sm:$0xff] }
 0x497   :  { %1069 = vmatpush.msrb.mxu2 %v2585_v59  ;;  %1089 = vmatpush.msrb.mxu3 %v2588_v5  ;;  %v2804_v5 = vld [vmem:[#allocation8 + $0xd0] sm:$0xff] }
 0x498   :  { %3230 = vst [vmem:[#allocation81_spill] sm:$0xff] %v2804_v5 }
 0x499   :  { %1070 = vmatpush.msrb.mxu2 %v2591_v6  ;;  %1090 = vmatpush.msrb.mxu3 %v2594_v7  ;;  %v2702_v7 = vld [vmem:[#allocation11 + $0x70] sm:$0xff] }
 0x49a   :  { %3221 = vst [vmem:[#allocation74_spill] sm:$0xff] %v2702_v7 }
 0x49b   :  { %1071 = vmatpush.msrb.mxu2 %v2597_v8  ;;  %1091 = vmatpush.msrb.mxu3 %v2600_v10  ;;  %v2699_v8 = vld [vmem:[#allocation11 + $0x78] sm:$0xff] }
 0x49c   :  { %3220 = vst [vmem:[#allocation73_spill] sm:$0xff] %v2699_v8 }
 0x49d   :  { %1072 = vmatpush.msrb.mxu2 %v2603_v13  ;;  %1092 = vmatpush.msrb.mxu3 %v2606_v53 }
 0x501   :  { %v797_v20 = vpop.f32.mrf.mxu3 }
 0x502   :  { %v820_v22 = vadd.f32 %v797_v20, %v402_v48  ;;  %v777_v48 = vpop.f32.mrf.mxu2  ;;  %v3192_v20 = vld [vmem:[#allocation38_spill] sm:$0xff] }
 0x504   :  { %v1527_v49 = vmul.f32 -1.442695, %v820_v22  ;;  %v370_v22 = vadd.f32 %v3192_v20, %v3168_v15 }
 0x506   :  { %1584 = vpow2.f32 %v1527_v49  ;;  %v800_v49 = vadd.f32 %v777_v48, %v370_v22 }
 0x50c   :  { %v1585_v50 = vpop.eup %1584 }
 0x50d   :  { %v824_v46 = vadd.f32 1.0, %v1585_v50  ;;  %v1526_v50 = vmul.f32 -1.442695, %v800_v49 }
 0x50f   :  { %1586 = vrcp.f32 %v824_v46  ;;  %v836_v35 = vand.u32 2147483648, %v824_v46  ;;  %v834_v28 = vand.u32 2147483647, %v824_v46  ;;  %vm830_vm9 = vweird.f32 %v824_v46 }
 0x510   :  { %1588 = vpow2.f32 %v1526_v50 }
 0x511   :  { %v837_v51 = vor.u32 1.1754944e-38, %v836_v35  ;;  %vm835_vm11 = vcmp.eq.f32.partialorder %v834_v28, 8.507059e+37 }
 0x515   :  { %v1587_v0 = vpop.eup %1586 }
 0x516   :  { %v826_v40 = vmul.f32 %v1587_v0, %v824_v46  ;;  %vm831_vm8 = vweird.f32 %v1587_v0 }
 0x517   :  { %vm832_vm10 = vmor %vm830_vm9, %vm831_vm8 }
 0x518   :  { %v827_v54 = vsub.f32 1.0, %v826_v40  ;;  %v1589_v40 = vpop.eup %1588 }
 0x51a   :  { %v828_v32 = vmul.f32 %v1587_v0, %v827_v54  ;;  %v804_v54 = vadd.f32 1.0, %v1589_v40 }
 0x51c   :  { %v829_v52 = vadd.f32 %v1587_v0, %v828_v32  ;;  %1590 = vrcp.f32 %v804_v54  ;;  %v816_v28 = vand.u32 2147483648, %v804_v54  ;;  %vm810_vm13 = vweird.f32 %v804_v54 }
 0x51e   :  { %v833_v47 = vsel %vm832_vm10, %v1587_v0, %v829_v52  ;;  %v814_v52 = vand.u32 2147483647, %v804_v54  ;;  %v817_v48 = vor.u32 1.1754944e-38, %v816_v28  ;;  %v2636_v28 = vld [vmem:[#allocation10 + $0xa8] sm:$0xff] }
 0x51f   :  { %v838_v37 = vsel %vm835_vm11, %v837_v51, %v833_v47  ;;  %v3193_v51 = vld [vmem:[#allocation43_spill] sm:$0xff]  ;;  %3199 = vst [vmem:[#allocation54_spill] sm:$0xff] %v2636_v28 }
 0x520   :  { %v840_v17 = vmul.f32 %v838_v37, %v2509_v9  ;;  %v434_v47 = vadd.f32 %v3193_v51, %v2417_v36  ;;  %vm815_vm15 = vcmp.eq.f32.partialorder %v814_v52, 8.507059e+37  ;;  %v2639_v52 = vld [vmem:[#allocation10 + $0x98] sm:$0xff]  ;;  %v2642_v51 = vld [vmem:[#allocation10 + $0x88] sm:$0xff] }
 0x521   :  { %3200 = vst [vmem:[#allocation55_spill] sm:$0xff] %v2639_v52 }
 0x522   :  { %857 = vmatmul.f32.vlgmr.msrb.gmra.mxu0 %v840_v17  ;;  %v1591_v32 = vpop.eup %1590  ;;  %3201 = vst [vmem:[#allocation56_spill] sm:$0xff] %v2642_v51 }
 0x523   :  { %v806_v46 = vmul.f32 %v1591_v32, %v804_v54  ;;  %vm811_vm12 = vweird.f32 %v1591_v32  ;;  %v2621_v54 = vld [vmem:[#allocation10 + $0xf8] sm:$0xff] }
 0x524   :  { %vm812_vm14 = vmor %vm810_vm13, %vm811_vm12  ;;  %3194 = vst [vmem:[#allocation33_spill] sm:$0xff] %v2621_v54 }
 0x525   :  { %v807_v53 = vsub.f32 1.0, %v806_v46 }
 0x527   :  { %v808_v35 = vmul.f32 %v1591_v32, %v807_v53 }
 0x529   :  { %v809_v0 = vadd.f32 %v1591_v32, %v808_v35  ;;  %v2627_v35 = vld [vmem:[#allocation10 + $0xd8] sm:$0xff] }
 0x52a   :  { %3196 = vst [vmem:[#allocation43_spill] sm:$0xff] %v2627_v35 }
 0x52b   :  { %v813_v37 = vsel %vm812_vm14, %v1591_v32, %v809_v0  ;;  %v2624_v32 = vld [vmem:[#allocation10 + $0xe8] sm:$0xff] }
 0x52c   :  { %v818_v22 = vsel %vm815_vm15, %v817_v48, %v813_v37  ;;  %3195 = vst [vmem:[#allocation38_spill] sm:$0xff] %v2624_v32  ;;  %v2630_v0 = vld [vmem:[#allocation10 + $0xc8] sm:$0xff] }
 0x52d   :  { %v863_v49 = vsub.f32 1.0, %v818_v22  ;;  %3197 = vst [vmem:[#allocation52_spill] sm:$0xff] %v2630_v0  ;;  %v2648_v37 = vld [vmem:[#allocation10 + $0x68] sm:$0xff] }
 0x52e   :  { %3203 = vst [vmem:[#allocation58_spill] sm:$0xff] %v2648_v37  ;;  %v2654_v48 = vld [vmem:[#allocation10 + $0x48] sm:$0xff] }
 0x52f   :  { %v864_v53 = vmul.f32 %v863_v49, %v2509_v9  ;;  %v2633_v9 = vld [vmem:[#allocation10 + $0xb8] sm:$0xff]  ;;  %3205 = vst [vmem:[#allocation60_spill] sm:$0xff] %v2654_v48 }
 0x530   :  { %3198 = vst [vmem:[#allocation53_spill] sm:$0xff] %v2633_v9  ;;  %v2663_v49 = vld [vmem:[#allocation10 + $0x18] sm:$0xff] }
 0x531   :  { %3208 = vst [vmem:[#allocation63_spill] sm:$0xff] %v2663_v49 }
 0x59f   :  { %v858_v17 = vpop.f32.mrf.mxu0 }
 0x5a0   :  { %v861_v20 = vadd.f32 %v858_v17, %v434_v47  ;;  %v2645_v47 = vld [vmem:[#allocation10 + $0x78] sm:$0xff] }
 0x5a1   :  { %3202 = vst [vmem:[#allocation57_spill] sm:$0xff] %v2645_v47  ;;  %v2651_v17 = vld [vmem:[#allocation10 + $0x58] sm:$0xff] }
 0x5a2   :  { %1592 = vtanh.f32 %v861_v20  ;;  %3204 = vst [vmem:[#allocation59_spill] sm:$0xff] %v2651_v17  ;;  %v2657_v20 = vld [vmem:[#allocation10 + $0x38] sm:$0xff] }
 0x5a3   :  { %3206 = vst [vmem:[#allocation61_spill] sm:$0xff] %v2657_v20 }
 0x5a8   :  { %v1593_v50 = vpop.eup %1592 }
 0x5a9   :  { %v865_v40 = vmul.f32 %v1593_v50, %v818_v22  ;;  %v2660_v22 = vld [vmem:[#allocation10 + $0x28] sm:$0xff] }
 0x5aa   :  { %3207 = vst [vmem:[#allocation62_spill] sm:$0xff] %v2660_v22  ;;  %v2666_v50 = vld [vmem:[#allocation10 + $0x8] sm:$0xff] }
 0x5ab   :  { %v2617_v46 = vadd.f32 %v865_v40, %v864_v53  ;;  %3209 = vst [vmem:[#allocation64_spill] sm:$0xff] %v2666_v50  ;;  %v3210_v40 = vld [vmem:[#allocation34_spill] sm:$0xff] }
 0x5ac   :  { %v405_v53 = vadd.f32 %v3210_v40, %v2326_v41  ;;  %v2691_v41 = vld [vmem:[#allocation13 + $0x40] sm:$0xff] }
 0x5ad   :  { %883 = vmatmul.f32.vlgmr.msra.gmra.mxu1 %v2617_v46  ;;  %903 = vmatmul.f32.vlgmr.msra.gmra.mxu2 %v2617_v46  ;;  %3218 = vst [vmem:[#allocation71_spill] sm:$0xff] %v2691_v41 }
 0x5ae   :  { %1137 = vmatpush.msra.mxu2 %v2621_v54 }
 0x5b0   :  { %1138 = vmatpush.msra.mxu2 %v2624_v32 }
 0x5b2   :  { %1139 = vmatpush.msra.mxu2 %v2627_v35 }
 0x5b4   :  { %1140 = vmatpush.msra.mxu2 %v2630_v0 }
 0x5b6   :  { %1141 = vmatpush.msra.mxu2 %v2633_v9 }
 0x5b8   :  { %1142 = vmatpush.msra.mxu2 %v2636_v28 }
 0x5ba   :  { %1143 = vmatpush.msra.mxu2 %v2639_v52 }
 0x5bc   :  { %1144 = vmatpush.msra.mxu2 %v2642_v51 }
 0x5be   :  { %1145 = vmatpush.msra.mxu2 %v2645_v47  ;;  %v2676_v47 = vld [vmem:[#allocation13 + $0x68] sm:$0xff] }
 0x5bf   :  { %3213 = vst [vmem:[#allocation66_spill] sm:$0xff] %v2676_v47 }
 0x5c0   :  { %1146 = vmatpush.msra.mxu2 %v2648_v37  ;;  %v2671_v37 = vld [vmem:[#allocation13 + $0x78] sm:$0xff] }
 0x5c1   :  { %3211 = vst [vmem:[#allocation34_spill] sm:$0xff] %v2671_v37  ;;  %1011 = vmatpush.msra.mxu0 %v2671_v37 }
 0x5c2   :  { %1147 = vmatpush.msra.mxu2 %v2651_v17 }
 0x5c4   :  { %1148 = vmatpush.msra.mxu2 %v2654_v48 }
 0x5c6   :  { %1149 = vmatpush.msra.mxu2 %v2657_v20  ;;  %v2673_v20 = vld [vmem:[#allocation13 + $0x70] sm:$0xff] }
 0x5c7   :  { %3212 = vst [vmem:[#allocation65_spill] sm:$0xff] %v2673_v20  ;;  %1012 = vmatpush.msra.mxu0 %v2673_v20 }
 0x5c8   :  { %1150 = vmatpush.msra.mxu2 %v2660_v22 }
 0x5c9   :  { %1013 = vmatpush.msra.mxu0 %v2676_v47 }
 0x5ca   :  { %1151 = vmatpush.msra.mxu2 %v2663_v49  ;;  %v2679_v49 = vld [vmem:[#allocation13 + $0x60] sm:$0xff] }
 0x5cb   :  { %3214 = vst [vmem:[#allocation67_spill] sm:$0xff] %v2679_v49  ;;  %1014 = vmatpush.msra.mxu0 %v2679_v49 }
 0x5cc   :  { %1152 = vmatpush.msra.mxu2 %v2666_v50  ;;  %v2682_v50 = vld [vmem:[#allocation13 + $0x58] sm:$0xff] }
 0x5cd   :  { %3215 = vst [vmem:[#allocation68_spill] sm:$0xff] %v2682_v50  ;;  %1015 = vmatpush.msra.mxu0 %v2682_v50 }
 0x630   :  { %v904_v48 = vpop.f32.mrf.mxu2 }
 0x631   :  { %v927_v17 = vadd.f32 %v904_v48, %v405_v53  ;;  %v2685_v48 = vld [vmem:[#allocation13 + $0x50] sm:$0xff]  ;;  %v2688_v53 = vld [vmem:[#allocation13 + $0x48] sm:$0xff] }
 0x632   :  { %3216 = vst [vmem:[#allocation69_spill] sm:$0xff] %v2685_v48  ;;  %1016 = vmatpush.msra.mxu0 %v2685_v48 }
 0x633   :  { %v1529_v22 = vmul.f32 -1.442695, %v927_v17  ;;  %3217 = vst [vmem:[#allocation70_spill] sm:$0xff] %v2688_v53 }
 0x634   :  { %1017 = vmatpush.msra.mxu0 %v2688_v53 }
 0x635   :  { %1594 = vpow2.f32 %v1529_v22  ;;  %v2694_v22 = vld [vmem:[#allocation13 + $0x38] sm:$0xff] }
 0x636   :  { %3219 = vst [vmem:[#allocation72_spill] sm:$0xff] %v2694_v22  ;;  %1018 = vmatpush.msra.mxu0 %v2691_v41 }
 0x638   :  { %1019 = vmatpush.msra.mxu0 %v2694_v22 }
 0x63b   :  { %v1595_v40 = vpop.eup %1594 }
 0x63c   :  { %v931_v17 = vadd.f32 1.0, %v1595_v40 }
 0x63e   :  { %1596 = vrcp.f32 %v931_v17  ;;  %v943_v9 = vand.u32 2147483648, %v931_v17  ;;  %v941_v40 = vand.u32 2147483647, %v931_v17  ;;  %vm937_vm1 = vweird.f32 %v931_v17 }
 0x640   :  { %v944_v32 = vor.u32 1.1754944e-38, %v943_v9  ;;  %vm942_vm3 = vcmp.eq.f32.partialorder %v941_v40, 8.507059e+37  ;;  %v2753_v9 = vld [vmem:[#allocation14 + $0x78] sm:$0xff]  ;;  %v2763_v40 = vld [vmem:[#allocation14 + $0x68] sm:$0xff] }
 0x641   :  { %1035 = vmatpush.msrb.mxu1 %v2753_v9 }
 0x644   :  { %v1597_v51 = vpop.eup %1596 }
 0x645   :  { %v933_v52 = vmul.f32 %v1597_v51, %v931_v17  ;;  %vm938_vm0 = vweird.f32 %v1597_v51 }
 0x646   :  { %vm939_vm2 = vmor %vm937_vm1, %vm938_vm0 }
 0x647   :  { %v934_v28 = vsub.f32 1.0, %v933_v52  ;;  %v2755_v52 = vld [vmem:[#allocation14 + $0x70] sm:$0xff] }
 0x648   :  { %1036 = vmatpush.msrb.mxu1 %v2755_v52 }
 0x649   :  { %v935_v0 = vmul.f32 %v1597_v51, %v934_v28  ;;  %v2705_v28 = vld [vmem:[#allocation11 + $0x68] sm:$0xff] }
 0x64a   :  { %3222 = vst [vmem:[#allocation75_spill] sm:$0xff] %v2705_v28  ;;  %1037 = vmatpush.msrb.mxu1 %v2763_v40 }
 0x64b   :  { %v936_v35 = vadd.f32 %v1597_v51, %v935_v0  ;;  %v2708_v0 = vld [vmem:[#allocation11 + $0x60] sm:$0xff] }
 0x64c   :  { %3223 = vst [vmem:[#allocation76_spill] sm:$0xff] %v2708_v0 }
 0x64d   :  { %v940_v54 = vsel %vm939_vm2, %v1597_v51, %v936_v35  ;;  %v2757_v51 = vld [vmem:[#allocation8 + $0x178] sm:$0xff] }
 0x64e   :  { %v945_v13 = vsel %vm942_vm3, %v944_v32, %v940_v54  ;;  %v2711_v54 = vld [vmem:[#allocation11 + $0x58] sm:$0xff]  ;;  %v2748_v32 = vld [vmem:[#allocation13] sm:$0xff] }
 0x64f   :  { %v947_v10 = vmul.f32 %v945_v13, %v2617_v46  ;;  %3224 = vst [vmem:[#allocation77_spill] sm:$0xff] %v2711_v54  ;;  %v2727_v13 = vld [vmem:[#allocation13 + $0x30] sm:$0xff] }
 0x650   :  { %1020 = vmatpush.msra.mxu0 %v2727_v13 }
 0x651   :  { %964 = vmatmul.f32.vlgmr.msra.gmra.mxu3 %v947_v10 }
 0x652   :  { %1198 = vmatpush.msra.mxu3 %v2699_v8  ;;  %v2796_v8 = vld [vmem:[#allocation8 + $0xe8] sm:$0xff] }
 0x654   :  { %1199 = vmatpush.msra.mxu3 %v2702_v7  ;;  %v2794_v7 = vld [vmem:[#allocation14 + $0x40] sm:$0xff] }
 0x656   :  { %1200 = vmatpush.msra.mxu3 %v2705_v28  ;;  %v2788_v28 = vld [vmem:[#allocation14 + $0x48] sm:$0xff] }
 0x658   :  { %1201 = vmatpush.msra.mxu3 %v2708_v0 }
 0x65a   :  { %1202 = vmatpush.msra.mxu3 %v2711_v54  ;;  %v2783_v54 = vld [vmem:[#allocation8 + $0x118] sm:$0xff] }
 0x65c   :  { %1203 = vmatpush.msra.mxu3 %v2276_v62  ;;  %v884_v62 = vpop.f32.mrf.mxu1 }
 0x65e   :  { %1204 = vmatpush.msra.mxu3 %v2281_v63  ;;  %v3225_v63 = vld [vmem:[#allocation39_spill] sm:$0xff] }
 0x65f   :  { %3226 = vst [vmem:[#allocation39_spill] sm:$0xff] %v2727_v13 }
 0x660   :  { %1205 = vmatpush.msra.mxu3 %v2288_v1  ;;  %v373_v1 = vadd.f32 %v3225_v63, %v3168_v15  ;;  %v2769_v63 = vld [vmem:[#allocation14 + $0x60] sm:$0xff]  ;;  %v2781_v15 = vld [vmem:[#allocation14 + $0x50] sm:$0xff] }
 0x661   :  { %1038 = vmatpush.msrb.mxu1 %v2769_v63 }
 0x662   :  { %1206 = vmatpush.msra.mxu3 %v2292_v2  ;;  %v907_v10 = vadd.f32 %v884_v62, %v373_v1  ;;  %v2765_v62 = vld [vmem:[#allocation8 + $0x160] sm:$0xff]  ;;  %v2771_v1 = vld [vmem:[#allocation8 + $0x148] sm:$0xff] }
 0x664   :  { %1207 = vmatpush.msra.mxu3 %v2295_v3  ;;  %v1528_v2 = vmul.f32 -1.442695, %v907_v10 }
 0x666   :  { %1208 = vmatpush.msra.mxu3 %v2300_v4  ;;  %1598 = vpow2.f32 %v1528_v2  ;;  %v2730_v4 = vld [vmem:[#allocation13 + $0x28] sm:$0xff]  ;;  %v2775_v2 = vld [vmem:[#allocation14 + $0x58] sm:$0xff] }
 0x667   :  { %3227 = vst [vmem:[#allocation78_spill] sm:$0xff] %v2730_v4  ;;  %1021 = vmatpush.msra.mxu0 %v2730_v4  ;;  %1039 = vmatpush.msrb.mxu1 %v2775_v2 }
 0x668   :  { %1209 = vmatpush.msra.mxu3 %v2305_v26 }
 0x669   :  { %1040 = vmatpush.msrb.mxu1 %v2781_v15 }
 0x66a   :  { %1210 = vmatpush.msra.mxu3 %v2312_v30  ;;  %v2735_v30 = vld [vmem:[#allocation13 + $0x20] sm:$0xff] }
 0x66b   :  { %3228 = vst [vmem:[#allocation79_spill] sm:$0xff] %v2735_v30  ;;  %1022 = vmatpush.msra.mxu0 %v2735_v30  ;;  %1041 = vmatpush.msrb.mxu1 %v2788_v28 }
 0x66c   :  { %1211 = vmatpush.msra.mxu3 %v2322_v39  ;;  %v1599_v3 = vpop.eup %1598  ;;  %v2738_v39 = vld [vmem:[#allocation13 + $0x18] sm:$0xff] }
 0x66d   :  { %v2732_v26 = vadd.f32 1.0, %v1599_v3  ;;  %3229 = vst [vmem:[#allocation80_spill] sm:$0xff] %v2738_v39  ;;  %1023 = vmatpush.msra.mxu0 %v2738_v39  ;;  %v2777_v3 = vld [vmem:[#allocation8 + $0x130] sm:$0xff]  ;;  %1042 = vmatpush.msrb.mxu1 %v2794_v7 }
 0x66e   :  { %1212 = vmatpush.msra.mxu3 %v2330_v44  ;;  %v2742_v44 = vld [vmem:[#allocation13 + $0x10] sm:$0xff] }
 0x66f   :  { %1600 = vrcp.f32 %v2732_v26  ;;  %1024 = vmatpush.msra.mxu0 %v2742_v44  ;;  %v923_v59 = vand.u32 2147483648, %v2732_v26  ;;  %vm917_vm5 = vweird.f32 %v2732_v26  ;;  %v921_v56 = vand.u32 2147483647, %v2732_v26 }
 0x670   :  { %1213 = vmatpush.msra.mxu3 %v2335_v45  ;;  %v2745_v45 = vld [vmem:[#allocation13 + $0x8] sm:$0xff] }
 0x671   :  { %1025 = vmatpush.msra.mxu0 %v2745_v45  ;;  %vm922_vm7 = vcmp.eq.f32.partialorder %v921_v56, 8.507059e+37  ;;  %v2840_v56 = vld [vmem:[#allocation8 + $0x58] sm:$0xff] }
 0x672   :  { %3236 = vst [vmem:[#allocation85_spill] sm:$0xff] %v2840_v56 }
 0x673   :  { %1026 = vmatpush.msra.mxu0 %v2748_v32 }
 0x675   :  { %v2750_v35 = vpop.eup %1600  ;;  %1097 = vmatpush.msrb.mxu0 %v2757_v51 }
 0x676   :  { %v913_v17 = vmul.f32 %v2750_v35, %v2732_v26  ;;  %vm918_vm4 = vweird.f32 %v2750_v35  ;;  %v924_v26 = vor.u32 1.1754944e-38, %v923_v59 }
 0x677   :  { %1098 = vmatpush.msrb.mxu0 %v2765_v62  ;;  %vm919_vm6 = vmor %vm917_vm5, %vm918_vm4 }
 0x678   :  { %v914_v10 = vsub.f32 1.0, %v913_v17  ;;  %v2790_v17 = vld [vmem:[#allocation8 + $0x100] sm:$0xff] }
 0x679   :  { %1099 = vmatpush.msrb.mxu0 %v2771_v1 }
 0x67a   :  { %v915_v0 = vmul.f32 %v2750_v35, %v914_v10  ;;  %v2802_v10 = vld [vmem:[#allocation14 + $0x38] sm:$0xff] }
 0x67b   :  { %1100 = vmatpush.msrb.mxu0 %v2777_v3  ;;  %1043 = vmatpush.msrb.mxu1 %v2802_v10 }
 0x67c   :  { %v916_v6 = vadd.f32 %v2750_v35, %v915_v0  ;;  %v3232_v0 = vld [vmem:[#allocation44_spill] sm:$0xff] }
 0x67d   :  { %1101 = vmatpush.msrb.mxu0 %v2783_v54  ;;  %v437_v23 = vadd.f32 %v3232_v0, %v2417_v36  ;;  %1044 = vmatpush.msrb.mxu1 %v2811_v43  ;;  %v2828_v0 = vld [vmem:[#allocation8 + $0x88] sm:$0xff] }
 0x67e   :  { %v920_v38 = vsel %vm919_vm6, %v2750_v35, %v916_v6  ;;  %3234 = vst [vmem:[#allocation83_spill] sm:$0xff] %v2828_v0  ;;  %v2832_v6 = vld [vmem:[#allocation14 + $0x18] sm:$0xff]  ;;  %v2834_v35 = vld [vmem:[#allocation8 + $0x70] sm:$0xff] }
 0x67f   :  { %1102 = vmatpush.msrb.mxu0 %v2790_v17  ;;  %v925_v36 = vsel %vm922_vm7, %v924_v26, %v920_v38  ;;  %1045 = vmatpush.msrb.mxu1 %v2820_v33  ;;  %3235 = vst [vmem:[#allocation84_spill] sm:$0xff] %v2834_v35  ;;  %v2846_v38 = vld [vmem:[#allocation8 + $0x40] sm:$0xff] }
 0x681   :  { %1103 = vmatpush.msrb.mxu0 %v2796_v8 }
 0x683   :  { %1104 = vmatpush.msrb.mxu0 %v2804_v5  ;;  %v2822_v5 = vld [vmem:[#allocation8 + $0xa0] sm:$0xff] }
 0x684   :  { %3233 = vst [vmem:[#allocation44_spill] sm:$0xff] %v2822_v5 }
 0x685   :  { %1105 = vmatpush.msrb.mxu0 %v2813_v42  ;;  %v2826_v42 = vld [vmem:[#allocation14 + $0x20] sm:$0xff] }
 0x686   :  { %1046 = vmatpush.msrb.mxu1 %v2826_v42 }
 0x687   :  { %1106 = vmatpush.msrb.mxu0 %v2822_v5  ;;  %v2853_v5 = vld [vmem:[#allocation8 + $0x28] sm:$0xff] }
 0x688   :  { %1047 = vmatpush.msrb.mxu1 %v2832_v6 }
 0x689   :  { %1107 = vmatpush.msrb.mxu0 %v2828_v0  ;;  %v2851_v0 = vld [vmem:[#allocation14] sm:$0xff] }
 0x68b   :  { %1108 = vmatpush.msrb.mxu0 %v2834_v35 }
 0x68d   :  { %1109 = vmatpush.msrb.mxu0 %v2840_v56 }
 0x68f   :  { %1110 = vmatpush.msrb.mxu0 %v2846_v38 }
 0x691   :  { %1111 = vmatpush.msrb.mxu0 %v2853_v5 }
 0x693   :  { %1112 = vmatpush.msrb.mxu0 %v2859_v29 }
 0x6d4   :  { %v965_v34 = vpop.f32.mrf.mxu3 }
 0x6d5   :  { %v968_v31 = vadd.f32 %v965_v34, %v437_v23  ;;  %v970_v34 = vsub.f32 1.0, %v925_v36  ;;  %v2838_v23 = vld [vmem:[#allocation14 + $0x10] sm:$0xff] }
 0x6d6   :  { %1048 = vmatpush.msrb.mxu1 %v2838_v23 }
 0x6d7   :  { %1602 = vtanh.f32 %v968_v31  ;;  %v2844_v31 = vld [vmem:[#allocation14 + $0x8] sm:$0xff]  ;;  %v971_v26 = vmul.f32 %v970_v34, %v2617_v46  ;;  %v2864_v46 = vld [vmem:[#allocation10 + $0xf0] sm:$0xff]  ;;  %v2876_v34 = vld [vmem:[#allocation10 + $0xc0] sm:$0xff] }
 0x6d8   :  { %1049 = vmatpush.msrb.mxu1 %v2844_v31 }
 0x6da   :  { %1050 = vmatpush.msrb.mxu1 %v2851_v0 }
 0x6dc   :  { %1117 = vmatpush.msra.mxu1 %v2864_v46 }
 0x6dd   :  { %v1603_v59 = vpop.eup %1602 }
 0x6de   :  { %v972_v35 = vmul.f32 %v1603_v59, %v925_v36  ;;  %v2868_v36 = vld [vmem:[#allocation10 + $0xe0] sm:$0xff]  ;;  %v1697_v59 = vld [vmem:[#allocation10 + $0xb0] sm:$0xff] }
 0x6df   :  { %1118 = vmatpush.msra.mxu1 %v2868_v36 }
 0x6e0   :  { %v2857_v56 = vadd.f32 %v972_v35, %v971_v26  ;;  %v2872_v35 = vld [vmem:[#allocation10 + $0xd0] sm:$0xff]  ;;  %v1698_v26 = vld [vmem:[#allocation10 + $0xa0] sm:$0xff] }
 0x6e1   :  { %1119 = vmatpush.msra.mxu1 %v2872_v35 }
 0x6e2   :  { %1027 = vmatmul.f32.vlgmr.msra.gmra.mxu0 %v2857_v56 }
 0x6e3   :  { %1224 = vmatpush.msra.mxu0 %v2671_v37  ;;  %1120 = vmatpush.msra.mxu1 %v2876_v34  ;;  %v1700_v37 = vld [vmem:[#allocation10 + $0x80] sm:$0xff] }
 0x6e5   :  { %1225 = vmatpush.msra.mxu0 %v2673_v20  ;;  %1121 = vmatpush.msra.mxu1 %v1697_v59  ;;  %v1699_v20 = vld [vmem:[#allocation10 + $0x90] sm:$0xff] }
 0x6e7   :  { %1226 = vmatpush.msra.mxu0 %v2676_v47  ;;  %1122 = vmatpush.msra.mxu1 %v1698_v26  ;;  %v1701_v47 = vld [vmem:[#allocation10 + $0x70] sm:$0xff] }
 0x6e9   :  { %1227 = vmatpush.msra.mxu0 %v2679_v49  ;;  %1123 = vmatpush.msra.mxu1 %v1699_v20  ;;  %v1702_v49 = vld [vmem:[#allocation10 + $0x60] sm:$0xff] }
 0x6eb   :  { %1228 = vmatpush.msra.mxu0 %v2682_v50  ;;  %1124 = vmatpush.msra.mxu1 %v1700_v37  ;;  %v1703_v50 = vld [vmem:[#allocation10 + $0x50] sm:$0xff] }
 0x6ed   :  { %1229 = vmatpush.msra.mxu0 %v2685_v48  ;;  %1125 = vmatpush.msra.mxu1 %v1701_v47  ;;  %v1704_v48 = vld [vmem:[#allocation10 + $0x40] sm:$0xff] }
 0x6ef   :  { %1230 = vmatpush.msra.mxu0 %v2688_v53  ;;  %1126 = vmatpush.msra.mxu1 %v1702_v49  ;;  %v1705_v53 = vld [vmem:[#allocation10 + $0x30] sm:$0xff] }
 0x6f1   :  { %1231 = vmatpush.msra.mxu0 %v2691_v41  ;;  %1127 = vmatpush.msra.mxu1 %v1703_v50  ;;  %v1706_v41 = vld [vmem:[#allocation10 + $0x20] sm:$0xff] }
 0x6f3   :  { %1232 = vmatpush.msra.mxu0 %v2694_v22  ;;  %1128 = vmatpush.msra.mxu1 %v1704_v48  ;;  %v1707_v22 = vld [vmem:[#allocation10 + $0x10] sm:$0xff] }
 0x6f5   :  { %1233 = vmatpush.msra.mxu0 %v2727_v13  ;;  %1129 = vmatpush.msra.mxu1 %v1705_v53  ;;  %v1708_v13 = vld [vmem:[#allocation10] sm:$0xff] }
 0x6f7   :  { %1234 = vmatpush.msra.mxu0 %v2730_v4  ;;  %1130 = vmatpush.msra.mxu1 %v1706_v41 }
 0x6f9   :  { %1235 = vmatpush.msra.mxu0 %v2735_v30  ;;  %1131 = vmatpush.msra.mxu1 %v1707_v22  ;;  %v2895_v30 = vld [vmem:[%s3066_s8] ss:$0 sm:$0xff] }
 0x6fb   :  { %1236 = vmatpush.msra.mxu0 %v2738_v39  ;;  %1132 = vmatpush.msra.mxu1 %v1708_v13 }
 0x6fd   :  { %1237 = vmatpush.msra.mxu0 %v2742_v44 }
 0x6ff   :  { %1238 = vmatpush.msra.mxu0 %v2745_v45 }
 0x701   :  { %1239 = vmatpush.msra.mxu0 %v2748_v32 }
 0x75f   :  { %v1028_v4 = vpop.f32.mrf.mxu0 }
 0x760   :  { %v1029_v39 = vadd.f32 %v2895_v30, %v1028_v4 }
 0x762   :  { %v1031_v29 = vmax.f32 %v1029_v39, 0.0 }
 0x764   :  { %1051 = vmatmul.f32.vlgmr.msrb.gmra.mxu1 %v1031_v29  ;;  %v2922_v29 = vld [vmem:[%s3068_s10] ss:$0 sm:$0xff]  ;;  %s1989_s10 = smov [#allocation17]  }
 0x765   :  { %1245 = vmatpush.msrb.mxu1 %v2753_v9  ;;  %s1496_s27 = sshll.u32 %s1989_s10, 4  ;;  %s1497_s27 = int_to_ptr.vmem [resolvable:$true] %s1496_s27 }
 0x766   :  { %1504 = dma.vmem_to_hbm [thread:$0]  %s1497_s27, 384, %s1499_s0, [#allocation18], %s1975_s29, %s1975_s29, %s1976_s30  }
 0x767   :  { %1246 = vmatpush.msrb.mxu1 %v2755_v52 }
 0x769   :  { %1247 = vmatpush.msrb.mxu1 %v2763_v40 }
 0x76b   :  { %1248 = vmatpush.msrb.mxu1 %v2769_v63 }
 0x76c   :  { %1133 = vmatmul.f32.vlgmr.msra.gmra.mxu1 %v2857_v56 }
 0x76d   :  { %1249 = vmatpush.msrb.mxu1 %v2775_v2 }
 0x76f   :  { %1250 = vmatpush.msrb.mxu1 %v2781_v15 }
 0x771   :  { %1251 = vmatpush.msrb.mxu1 %v2788_v28 }
 0x773   :  { %1252 = vmatpush.msrb.mxu1 %v2794_v7 }
 0x775   :  { %1253 = vmatpush.msrb.mxu1 %v2802_v10 }
 0x777   :  { %1254 = vmatpush.msrb.mxu1 %v2811_v43 }
 0x779   :  { %1255 = vmatpush.msrb.mxu1 %v2820_v33 }
 0x77b   :  { %1256 = vmatpush.msrb.mxu1 %v2826_v42 }
 0x77d   :  { %1257 = vmatpush.msrb.mxu1 %v2832_v6 }
 0x77f   :  { %1258 = vmatpush.msrb.mxu1 %v2838_v23 }
 0x781   :  { %1259 = vmatpush.msrb.mxu1 %v2844_v31 }
 0x783   :  { %1260 = vmatpush.msrb.mxu1 %v2851_v0 }
 0x785   :  { %1327 = vmatpush.msra.mxu1 %v2864_v46 }
 0x787   :  { %1328 = vmatpush.msra.mxu1 %v2868_v36  ;;  %v3272_v36 = vld [vmem:[#allocation59_spill] sm:$0xff] }
 0x789   :  { %1329 = vmatpush.msra.mxu1 %v2872_v35  ;;  %v3273_v35 = vld [vmem:[#allocation60_spill] sm:$0xff] }
 0x78b   :  { %1330 = vmatpush.msra.mxu1 %v2876_v34  ;;  %v3274_v34 = vld [vmem:[#allocation61_spill] sm:$0xff] }
 0x78d   :  { %1331 = vmatpush.msra.mxu1 %v1697_v59  ;;  %v3275_v59 = vld [vmem:[#allocation62_spill] sm:$0xff] }
 0x78f   :  { %1332 = vmatpush.msra.mxu1 %v1698_v26  ;;  %v3276_v26 = vld [vmem:[#allocation63_spill] sm:$0xff] }
 0x791   :  { %1333 = vmatpush.msra.mxu1 %v1699_v20  ;;  %v3257_v20 = vld [vmem:[#allocation48_spill] sm:$0xff] }
 0x793   :  { %1334 = vmatpush.msra.mxu1 %v1700_v37  ;;  %v3256_v37 = vld [vmem:[#allocation47_spill] sm:$0xff] }
 0x795   :  { %1335 = vmatpush.msra.mxu1 %v1701_v47  ;;  %v3255_v47 = vld [vmem:[#allocation85_spill] sm:$0xff] }
 0x797   :  { %1336 = vmatpush.msra.mxu1 %v1702_v49  ;;  %v3258_v49 = vld [vmem:[#allocation49_spill] sm:$0xff] }
 0x799   :  { %1337 = vmatpush.msra.mxu1 %v1703_v50  ;;  %v3259_v50 = vld [vmem:[#allocation50_spill] sm:$0xff] }
 0x79b   :  { %1338 = vmatpush.msra.mxu1 %v1704_v48  ;;  %v3260_v48 = vld [vmem:[#allocation33_spill] sm:$0xff] }
 0x79d   :  { %1339 = vmatpush.msra.mxu1 %v1705_v53  ;;  %v3261_v53 = vld [vmem:[#allocation51_spill] sm:$0xff] }
 0x79f   :  { %1340 = vmatpush.msra.mxu1 %v1706_v41  ;;  %v3238_v41 = vld [vmem:[#allocation26_spill] sm:$0xff] }
 0x7a1   :  { %1341 = vmatpush.msra.mxu1 %v1707_v22  ;;  %v3262_v22 = vld [vmem:[#allocation86_spill] sm:$0xff] }
 0x7a3   :  { %1342 = vmatpush.msra.mxu1 %v1708_v13  ;;  %v3264_v13 = vld [vmem:[#allocation43_spill] sm:$0xff] }
 0x7e1   :  { %v1052_v4 = vpop.f32.mrf.mxu1 }
 0x7e2   :  { %v1053_v39 = vadd.f32 %v2922_v29, %v1052_v4  ;;  %v3277_v4 = vld [vmem:[#allocation64_spill] sm:$0xff] }
 0x7e4   :  { %1055 = vst [vmem:[#allocation16] sm:$0xff] %v1053_v39  ;;  %v1056_v46 = vmax.f32 %v1053_v39, 0.0 }
 0x7e6   :  { %1073 = vmatmul.f32.vlgmr.msrb.gmra.mxu2 %v1056_v46  ;;  %1093 = vmatmul.f32.vlgmr.msrb.gmra.mxu3 %v1056_v46 }
 0x7e7   :  { %1113 = vmatmul.f32.vlgmr.msrb.gmra.mxu0 %v1056_v46  ;;  %1267 = vmatpush.msrb.mxu2 %v2513_v11  ;;  %v3239_v11 = vld [vmem:[#allocation27_spill] sm:$0xff] }
 0x7e8   :  { %1287 = vmatpush.msrb.mxu3 %v2516_v12  ;;  %1307 = vmatpush.msrb.mxu0 %v2757_v51  ;;  %v3240_v12 = vld [vmem:[#allocation81_spill] sm:$0xff]  ;;  %v3265_v51 = vld [vmem:[#allocation52_spill] sm:$0xff] }
 0x7e9   :  { %1268 = vmatpush.msrb.mxu2 %v2519_v14  ;;  %v3241_v14 = vld [vmem:[#allocation28_spill] sm:$0xff] }
 0x7ea   :  { %1288 = vmatpush.msrb.mxu3 %v2522_v16  ;;  %1308 = vmatpush.msrb.mxu0 %v2765_v62  ;;  %v3242_v16 = vld [vmem:[#allocation29_spill] sm:$0xff] }
 0x7eb   :  { %1269 = vmatpush.msrb.mxu2 %v2525_v18  ;;  %v3243_v18 = vld [vmem:[#allocation82_spill] sm:$0xff]  ;;  %v3266_v62 = vld [vmem:[#allocation53_spill] sm:$0xff] }
 0x7ec   :  { %1289 = vmatpush.msrb.mxu3 %v2528_v19  ;;  %1309 = vmatpush.msrb.mxu0 %v2771_v1  ;;  %v3244_v19 = vld [vmem:[#allocation30_spill] sm:$0xff] }
 0x7ed   :  { %1270 = vmatpush.msrb.mxu2 %v2531_v25  ;;  %v3245_v25 = vld [vmem:[#allocation31_spill] sm:$0xff]  ;;  %v3267_v1 = vld [vmem:[#allocation54_spill] sm:$0xff] }
 0x7ee   :  { %1153 = vmatmul.f32.vlgmr.msra.gmra.mxu2 %v2857_v56  ;;  %1290 = vmatpush.msrb.mxu3 %v2534_v55  ;;  %v3246_v55 = vld [vmem:[#allocation44_spill] sm:$0xff] }
 0x7ef   :  { %1271 = vmatpush.msrb.mxu2 %v2537_v57  ;;  %1310 = vmatpush.msrb.mxu0 %v2777_v3  ;;  %v3247_v57 = vld [vmem:[#allocation36_spill] sm:$0xff]  ;;  %v3268_v3 = vld [vmem:[#allocation55_spill] sm:$0xff] }
 0x7f0   :  { %1291 = vmatpush.msrb.mxu3 %v2540_v58  ;;  %v3248_v58 = vld [vmem:[#allocation41_spill] sm:$0xff] }
 0x7f1   :  { %1272 = vmatpush.msrb.mxu2 %v2543_v60  ;;  %1311 = vmatpush.msrb.mxu0 %v2783_v54  ;;  %v3249_v60 = vld [vmem:[#allocation83_spill] sm:$0xff]  ;;  %v3263_v54 = vld [vmem:[#allocation38_spill] sm:$0xff] }
 0x7f2   :  { %1292 = vmatpush.msrb.mxu3 %v2546_v61  ;;  %v3250_v61 = vld [vmem:[#allocation32_spill] sm:$0xff] }
 0x7f3   :  { %1273 = vmatpush.msrb.mxu2 %v2549_v21  ;;  %1312 = vmatpush.msrb.mxu0 %v2790_v17  ;;  %v3251_v21 = vld [vmem:[#allocation37_spill] sm:$0xff]  ;;  %v3269_v17 = vld [vmem:[#allocation56_spill] sm:$0xff] }
 0x7f4   :  { %1293 = vmatpush.msrb.mxu3 %v2552_v24  ;;  %v3252_v24 = vld [vmem:[#allocation84_spill] sm:$0xff] }
 0x7f5   :  { %1274 = vmatpush.msrb.mxu2 %v2555_v27  ;;  %1313 = vmatpush.msrb.mxu0 %v2796_v8  ;;  %v3253_v27 = vld [vmem:[#allocation42_spill] sm:$0xff] }
 0x7f6   :  { %1294 = vmatpush.msrb.mxu3 %v3238_v41  ;;  %v3254_v8 = vld [vmem:[#allocation46_spill] sm:$0xff]  ;;  %v3278_v41 = vld [vmem:[#allocation35_spill] sm:$0xff] }
 0x7f7   :  { %1275 = vmatpush.msrb.mxu2 %v3239_v11  ;;  %1314 = vmatpush.msrb.mxu0 %v3240_v12 }
 0x7f8   :  { %1295 = vmatpush.msrb.mxu3 %v3241_v14 }
 0x7f9   :  { %1276 = vmatpush.msrb.mxu2 %v3242_v16  ;;  %1315 = vmatpush.msrb.mxu0 %v3243_v18 }
 0x7fa   :  { %1296 = vmatpush.msrb.mxu3 %v3244_v19 }
 0x7fb   :  { %1277 = vmatpush.msrb.mxu2 %v3245_v25  ;;  %1316 = vmatpush.msrb.mxu0 %v3246_v55 }
 0x7fc   :  { %1297 = vmatpush.msrb.mxu3 %v3247_v57 }
 0x7fd   :  { %1278 = vmatpush.msrb.mxu2 %v3248_v58  ;;  %1317 = vmatpush.msrb.mxu0 %v3249_v60 }
 0x7fe   :  { %1298 = vmatpush.msrb.mxu3 %v3250_v61 }
 0x7ff   :  { %1279 = vmatpush.msrb.mxu2 %v3251_v21  ;;  %1318 = vmatpush.msrb.mxu0 %v3252_v24 }
 0x800   :  { %1299 = vmatpush.msrb.mxu3 %v3253_v27 }
 0x801   :  { %1280 = vmatpush.msrb.mxu2 %v3254_v8  ;;  %1319 = vmatpush.msrb.mxu0 %v3255_v47 }
 0x802   :  { %1300 = vmatpush.msrb.mxu3 %v3256_v37  ;;  %v3279_v37 = vld [vmem:[#allocation73_spill] sm:$0xff] }
 0x803   :  { %1281 = vmatpush.msrb.mxu2 %v3257_v20  ;;  %1320 = vmatpush.msrb.mxu0 %v2846_v38  ;;  %v3271_v38 = vld [vmem:[#allocation58_spill] sm:$0xff] }
 0x804   :  { %1301 = vmatpush.msrb.mxu3 %v3258_v49  ;;  %v3280_v20 = vld [vmem:[#allocation74_spill] sm:$0xff]  ;;  %v3281_v49 = vld [vmem:[#allocation75_spill] sm:$0xff] }
 0x805   :  { %1282 = vmatpush.msrb.mxu2 %v3259_v50  ;;  %1321 = vmatpush.msrb.mxu0 %v2853_v5  ;;  %v3270_v5 = vld [vmem:[#allocation57_spill] sm:$0xff]  ;;  %v3282_v50 = vld [vmem:[#allocation76_spill] sm:$0xff] }
 0x806   :  { %1302 = vmatpush.msrb.mxu3 %v3261_v53  ;;  %v1709_v53 = vld [vmem:[#allocation11 + $0x50] sm:$0xff] }
 0x807   :  { %1347 = vmatpush.msra.mxu2 %v3260_v48  ;;  %1322 = vmatpush.msrb.mxu0 %v3262_v22  ;;  %v3283_v48 = vld [vmem:[#allocation77_spill] sm:$0xff] }
 0x808   :  { %v1710_v22 = vld [vmem:[#allocation11 + $0x48] sm:$0xff] }
 0x809   :  { %1348 = vmatpush.msra.mxu2 %v3263_v54  ;;  %v1711_v54 = vld [vmem:[#allocation11 + $0x40] sm:$0xff] }
 0x80b   :  { %1349 = vmatpush.msra.mxu2 %v3264_v13  ;;  %v1712_v13 = vld [vmem:[#allocation11 + $0x38] sm:$0xff] }
 0x80d   :  { %1350 = vmatpush.msra.mxu2 %v3265_v51  ;;  %v1713_v51 = vld [vmem:[#allocation11 + $0x30] sm:$0xff] }
 0x80f   :  { %1351 = vmatpush.msra.mxu2 %v3266_v62  ;;  %v1714_v62 = vld [vmem:[#allocation11 + $0x28] sm:$0xff] }
 0x811   :  { %1352 = vmatpush.msra.mxu2 %v3267_v1  ;;  %v1715_v1 = vld [vmem:[#allocation11 + $0x20] sm:$0xff] }
 0x813   :  { %1353 = vmatpush.msra.mxu2 %v3268_v3  ;;  %v1716_v3 = vld [vmem:[#allocation11 + $0x18] sm:$0xff] }
 0x815   :  { %1354 = vmatpush.msra.mxu2 %v3269_v17  ;;  %v1717_v17 = vld [vmem:[#allocation11 + $0x10] sm:$0xff] }
 0x817   :  { %1355 = vmatpush.msra.mxu2 %v3270_v5  ;;  %v1718_v5 = vld [vmem:[#allocation11 + $0x8] sm:$0xff] }
 0x819   :  { %1356 = vmatpush.msra.mxu2 %v3271_v38  ;;  %v1719_v38 = vld [vmem:[#allocation11] sm:$0xff] }
 0x81b   :  { %1357 = vmatpush.msra.mxu2 %v3272_v36  ;;  %v3284_v36 = vld [vmem:[#allocation40_spill] sm:$0xff] }
 0x81d   :  { %1358 = vmatpush.msra.mxu2 %v3273_v35 }
 0x81f   :  { %1359 = vmatpush.msra.mxu2 %v3274_v34  ;;  %v1134_v34 = vpop.f32.mrf.mxu1 }
 0x821   :  { %1360 = vmatpush.msra.mxu2 %v3275_v59 }
 0x823   :  { %1361 = vmatpush.msra.mxu2 %v3276_v26 }
 0x825   :  { %1362 = vmatpush.msra.mxu2 %v3277_v4 }
 0x869   :  { %v1074_v39 = vpop.f32.mrf.mxu2  ;;  %v1094_v46 = vpop.f32.mrf.mxu3 }
 0x86a   :  { %v1095_v11 = vadd.f32 %v1094_v46, %v3278_v41  ;;  %v1075_v35 = vadd.f32 %v1074_v39, %v3284_v36 }
 0x86c   :  { %v1157_v59 = vadd.f32 %v1134_v34, %v1075_v35 }
 0x86e   :  { %v1530_v26 = vmul.f32 -1.442695, %v1157_v59 }
 0x871   :  { %v1154_v12 = vpop.f32.mrf.mxu2 }
 0x872   :  { %v1177_v14 = vadd.f32 %v1154_v12, %v1095_v11 }
 0x874   :  { %v1531_v16 = vmul.f32 -1.442695, %v1177_v14 }
 0x876   :  { %1604 = vpow2.f32 %v1531_v16 }
 0x87c   :  { %v1605_v18 = vpop.eup %1604 }
 0x87d   :  { %v1181_v19 = vadd.f32 1.0, %v1605_v18  ;;  %v1114_v18 = vpop.f32.mrf.mxu0 }
 0x87f   :  { %1606 = vrcp.f32 %v1181_v19  ;;  %v1193_v58 = vand.u32 2147483648, %v1181_v19  ;;  %v1191_v61 = vand.u32 2147483647, %v1181_v19  ;;  %vm1187_vm9 = vweird.f32 %v1181_v19 }
 0x880   :  { %1608 = vpow2.f32 %v1530_v26 }
 0x881   :  { %v1194_v24 = vor.u32 1.1754944e-38, %v1193_v58  ;;  %vm1192_vm11 = vcmp.eq.f32.partialorder %v1191_v61, 8.507059e+37 }
 0x885   :  { %v1607_v25 = vpop.eup %1606 }
 0x886   :  { %v1183_v55 = vmul.f32 %v1607_v25, %v1181_v19  ;;  %vm1188_vm8 = vweird.f32 %v1607_v25  ;;  %v1609_v4 = vpop.eup %1608 }
 0x887   :  { %vm1189_vm10 = vmor %vm1187_vm9, %vm1188_vm8  ;;  %v1161_v46 = vadd.f32 1.0, %v1609_v4 }
 0x888   :  { %v1184_v57 = vsub.f32 1.0, %v1183_v55 }
 0x889   :  { %1610 = vrcp.f32 %v1161_v46  ;;  %vm1167_vm13 = vweird.f32 %v1161_v46  ;;  %v1171_v55 = vand.u32 2147483647, %v1161_v46 }
 0x88a   :  { %v1185_v60 = vmul.f32 %v1607_v25, %v1184_v57  ;;  %v3285_v57 = vld [vmem:[#allocation45_spill] sm:$0xff] }
 0x88b   :  { %v1115_v58 = vadd.f32 %v1114_v18, %v3285_v57  ;;  %vm1172_vm15 = vcmp.eq.f32.partialorder %v1171_v55, 8.507059e+37 }
 0x88c   :  { %v1186_v21 = vadd.f32 %v1607_v25, %v1185_v60 }
 0x88e   :  { %v1190_v27 = vsel %vm1189_vm10, %v1607_v25, %v1186_v21  ;;  %v1173_v25 = vand.u32 2147483648, %v1161_v46 }
 0x88f   :  { %v1195_v8 = vsel %vm1192_vm11, %v1194_v24, %v1190_v27  ;;  %v1611_v11 = vpop.eup %1610 }
 0x890   :  { %v1197_v47 = vmul.f32 %v1195_v8, %v2857_v56  ;;  %v1163_v12 = vmul.f32 %v1611_v11, %v1161_v46  ;;  %vm1168_vm12 = vweird.f32 %v1611_v11  ;;  %v1174_v61 = vor.u32 1.1754944e-38, %v1173_v25 }
 0x891   :  { %vm1169_vm14 = vmor %vm1167_vm13, %vm1168_vm12 }
 0x892   :  { %1214 = vmatmul.f32.vlgmr.msra.gmra.mxu3 %v1197_v47  ;;  %v1164_v14 = vsub.f32 1.0, %v1163_v12 }
 0x893   :  { %1408 = vmatpush.msra.mxu3 %v3279_v37 }
 0x894   :  { %v1165_v16 = vmul.f32 %v1611_v11, %v1164_v14 }
 0x895   :  { %1409 = vmatpush.msra.mxu3 %v3280_v20 }
 0x896   :  { %v1166_v19 = vadd.f32 %v1611_v11, %v1165_v16 }
 0x897   :  { %1410 = vmatpush.msra.mxu3 %v3281_v49  ;;  %v3286_v49 = vld [vmem:[#allocation34_spill] sm:$0xff] }
 0x898   :  { %v1170_v39 = vsel %vm1169_vm14, %v1611_v11, %v1166_v19 }
 0x899   :  { %1411 = vmatpush.msra.mxu3 %v3282_v50  ;;  %v1175_v24 = vsel %vm1172_vm15, %v1174_v61, %v1170_v39  ;;  %v3287_v50 = vld [vmem:[#allocation65_spill] sm:$0xff] }
 0x89a   :  { %v1220_v27 = vsub.f32 1.0, %v1175_v24 }
 0x89b   :  { %1412 = vmatpush.msra.mxu3 %v3283_v48  ;;  %v3288_v48 = vld [vmem:[#allocation66_spill] sm:$0xff] }
 0x89c   :  { %v1221_v47 = vmul.f32 %v1220_v27, %v2857_v56  ;;  %v3293_v56 = vld [vmem:[#allocation71_spill] sm:$0xff] }
 0x89d   :  { %1413 = vmatpush.msra.mxu3 %v1709_v53  ;;  %v3289_v53 = vld [vmem:[#allocation67_spill] sm:$0xff] }
 0x89f   :  { %1414 = vmatpush.msra.mxu3 %v1710_v22  ;;  %v3290_v22 = vld [vmem:[#allocation68_spill] sm:$0xff] }
 0x8a1   :  { %1415 = vmatpush.msra.mxu3 %v1711_v54  ;;  %v3291_v54 = vld [vmem:[#allocation69_spill] sm:$0xff] }
 0x8a3   :  { %1416 = vmatpush.msra.mxu3 %v1712_v13  ;;  %v3292_v13 = vld [vmem:[#allocation70_spill] sm:$0xff] }
 0x8a5   :  { %1417 = vmatpush.msra.mxu3 %v1713_v51  ;;  %v3294_v51 = vld [vmem:[#allocation72_spill] sm:$0xff] }
 0x8a7   :  { %1418 = vmatpush.msra.mxu3 %v1714_v62  ;;  %v3295_v62 = vld [vmem:[#allocation39_spill] sm:$0xff] }
 0x8a9   :  { %1419 = vmatpush.msra.mxu3 %v1715_v1  ;;  %v3296_v1 = vld [vmem:[#allocation78_spill] sm:$0xff] }
 0x8ab   :  { %1420 = vmatpush.msra.mxu3 %v1716_v3  ;;  %v3297_v3 = vld [vmem:[#allocation79_spill] sm:$0xff] }
 0x8ad   :  { %1421 = vmatpush.msra.mxu3 %v1717_v17  ;;  %v3298_v17 = vld [vmem:[#allocation80_spill] sm:$0xff] }
 0x8af   :  { %1422 = vmatpush.msra.mxu3 %v1718_v5 }
 0x8b1   :  { %1423 = vmatpush.msra.mxu3 %v1719_v38 }
 0x915   :  { %v1215_v60 = vpop.f32.mrf.mxu3 }
 0x916   :  { %v1218_v21 = vadd.f32 %v1215_v60, %v1115_v58 }
 0x918   :  { %1612 = vtanh.f32 %v1218_v21 }
 0x91e   :  { %v1613_v8 = vpop.eup %1612 }
 0x91f   :  { %v1222_v37 = vmul.f32 %v1613_v8, %v1175_v24 }
 0x921   :  { %v3000_v20 = vadd.f32 %v1222_v37, %v1221_v47 }
 0x923   :  { %1240 = vmatmul.f32.vlgmr.msra.gmra.mxu0 %v3000_v20 }
 0x924   :  { %1434 = vmatpush.msra.mxu0 %v3286_v49 }
 0x926   :  { %1435 = vmatpush.msra.mxu0 %v3287_v50 }
 0x928   :  { %1436 = vmatpush.msra.mxu0 %v3288_v48 }
 0x92a   :  { %1437 = vmatpush.msra.mxu0 %v3289_v53 }
 0x92c   :  { %1438 = vmatpush.msra.mxu0 %v3290_v22 }
 0x92e   :  { %1439 = vmatpush.msra.mxu0 %v3291_v54 }
 0x930   :  { %1440 = vmatpush.msra.mxu0 %v3292_v13 }
 0x932   :  { %1441 = vmatpush.msra.mxu0 %v3293_v56 }
 0x934   :  { %1442 = vmatpush.msra.mxu0 %v3294_v51 }
 0x936   :  { %1443 = vmatpush.msra.mxu0 %v3295_v62 }
 0x938   :  { %1444 = vmatpush.msra.mxu0 %v3296_v1 }
 0x93a   :  { %1445 = vmatpush.msra.mxu0 %v3297_v3 }
 0x93c   :  { %1446 = vmatpush.msra.mxu0 %v3298_v17 }
 0x93e   :  { %1447 = vmatpush.msra.mxu0 %v2742_v44 }
 0x940   :  { %1448 = vmatpush.msra.mxu0 %v2745_v45 }
 0x942   :  { %1449 = vmatpush.msra.mxu0 %v2748_v32 }
 0x9a0   :  { %v1241_v5 = vpop.f32.mrf.mxu0 }
 0x9a1   :  { %v1242_v38 = vadd.f32 %v2895_v30, %v1241_v5 }
 0x9a3   :  { %v1244_v35 = vmax.f32 %v1242_v38, 0.0 }
 0x9a5   :  { %1261 = vmatmul.f32.vlgmr.msrb.gmra.mxu1 %v1244_v35 }
 0x9a6   :  { %1455 = vmatpush.msrb.mxu1 %v2753_v9 }
 0x9a8   :  { %1456 = vmatpush.msrb.mxu1 %v2755_v52 }
 0x9aa   :  { %1457 = vmatpush.msrb.mxu1 %v2763_v40 }
 0x9ac   :  { %1458 = vmatpush.msrb.mxu1 %v2769_v63 }
 0x9ad   :  { %1343 = vmatmul.f32.vlgmr.msra.gmra.mxu1 %v3000_v20 }
 0x9ae   :  { %1459 = vmatpush.msrb.mxu1 %v2775_v2 }
 0x9b0   :  { %1460 = vmatpush.msrb.mxu1 %v2781_v15 }
 0x9b2   :  { %1461 = vmatpush.msrb.mxu1 %v2788_v28 }
 0x9b4   :  { %1462 = vmatpush.msrb.mxu1 %v2794_v7 }
 0x9b6   :  { %1463 = vmatpush.msrb.mxu1 %v2802_v10 }
 0x9b8   :  { %1464 = vmatpush.msrb.mxu1 %v2811_v43 }
 0x9ba   :  { %1465 = vmatpush.msrb.mxu1 %v2820_v33 }
 0x9bc   :  { %1466 = vmatpush.msrb.mxu1 %v2826_v42 }
 0x9be   :  { %1467 = vmatpush.msrb.mxu1 %v2832_v6 }
 0x9c0   :  { %1468 = vmatpush.msrb.mxu1 %v2838_v23 }
 0x9c2   :  { %1469 = vmatpush.msrb.mxu1 %v2844_v31 }
 0x9c4   :  { %1470 = vmatpush.msrb.mxu1 %v2851_v0 }
 0xa22   :  { %v1262_v15 = vpop.f32.mrf.mxu1 }
 0xa23   :  { %v1263_v28 = vadd.f32 %v2922_v29, %v1262_v15 }
 0xa25   :  { %1265 = vst [vmem:[#allocation16 + $0x8] sm:$0xff] %v1263_v28  ;;  %v1266_v7 = vmax.f32 %v1263_v28, 0.0 }
 0xa27   :  { %1283 = vmatmul.f32.vlgmr.msrb.gmra.mxu2 %v1266_v7  ;;  %1303 = vmatmul.f32.vlgmr.msrb.gmra.mxu3 %v1266_v7 }
 0xa28   :  { %1323 = vmatmul.f32.vlgmr.msrb.gmra.mxu0 %v1266_v7 }
 0xa2a   :  { %v1344_v4 = vpop.f32.mrf.mxu1 }
 0xa2f   :  { %1363 = vmatmul.f32.vlgmr.msra.gmra.mxu2 %v3000_v20 }
 0xaa5   :  { %v1324_v55 = vpop.f32.mrf.mxu0 }
 0xaa6   :  { %v1325_v61 = vadd.f32 %v1324_v55, %v3285_v57 }
 0xaaa   :  { %v1284_v33 = vpop.f32.mrf.mxu2  ;;  %v1304_v42 = vpop.f32.mrf.mxu3 }
 0xaab   :  { %v1305_v43 = vadd.f32 %v1304_v42, %v3278_v41  ;;  %v1285_v26 = vadd.f32 %v1284_v33, %v3284_v36 }
 0xaad   :  { %v1367_v46 = vadd.f32 %v1344_v4, %v1285_v26 }
 0xaaf   :  { %v1532_v11 = vmul.f32 -1.442695, %v1367_v46 }
 0xab2   :  { %v1364_v44 = vpop.f32.mrf.mxu2 }
 0xab3   :  { %v1387_v45 = vadd.f32 %v1364_v44, %v1305_v43 }
 0xab5   :  { %v1533_v32 = vmul.f32 -1.442695, %v1387_v45 }
 0xab7   :  { %1614 = vpow2.f32 %v1533_v32 }
 0xabd   :  { %v1615_v9 = vpop.eup %1614 }
 0xabe   :  { %v1391_v52 = vadd.f32 1.0, %v1615_v9 }
 0xac0   :  { %1616 = vrcp.f32 %v1391_v52  ;;  %v1403_v10 = vand.u32 2147483648, %v1391_v52  ;;  %v1401_v6 = vand.u32 2147483647, %v1391_v52  ;;  %vm1397_vm1 = vweird.f32 %v1391_v52 }
 0xac1   :  { %1618 = vpow2.f32 %v1532_v11 }
 0xac2   :  { %v1404_v31 = vor.u32 1.1754944e-38, %v1403_v10  ;;  %vm1402_vm3 = vcmp.eq.f32.partialorder %v1401_v6, 8.507059e+37 }
 0xac6   :  { %v1617_v40 = vpop.eup %1616 }
 0xac7   :  { %v1393_v63 = vmul.f32 %v1617_v40, %v1391_v52  ;;  %vm1398_vm0 = vweird.f32 %v1617_v40  ;;  %v1619_v12 = vpop.eup %1618 }
 0xac8   :  { %vm1399_vm2 = vmor %vm1397_vm1, %vm1398_vm0  ;;  %v1371_v14 = vadd.f32 1.0, %v1619_v12 }
 0xac9   :  { %v1394_v2 = vsub.f32 1.0, %v1393_v63 }
 0xaca   :  { %1620 = vrcp.f32 %v1371_v14  ;;  %v1383_v39 = vand.u32 2147483648, %v1371_v14  ;;  %vm1377_vm5 = vweird.f32 %v1371_v14  ;;  %v1381_v60 = vand.u32 2147483647, %v1371_v14 }
 0xacb   :  { %v1395_v0 = vmul.f32 %v1617_v40, %v1394_v2 }
 0xacc   :  { %v1384_v24 = vor.u32 1.1754944e-38, %v1383_v39  ;;  %vm1382_vm7 = vcmp.eq.f32.partialorder %v1381_v60, 8.507059e+37 }
 0xacd   :  { %v1396_v23 = vadd.f32 %v1617_v40, %v1395_v0 }
 0xacf   :  { %v1400_v34 = vsel %vm1399_vm2, %v1617_v40, %v1396_v23 }
 0xad0   :  { %v1405_v41 = vsel %vm1402_vm3, %v1404_v31, %v1400_v34  ;;  %v1621_v16 = vpop.eup %1620 }
 0xad1   :  { %v1407_v59 = vmul.f32 %v1405_v41, %v3000_v20  ;;  %v1373_v18 = vmul.f32 %v1621_v16, %v1371_v14  ;;  %vm1378_vm4 = vweird.f32 %v1621_v16 }
 0xad2   :  { %vm1379_vm6 = vmor %vm1377_vm5, %vm1378_vm4 }
 0xad3   :  { %1424 = vmatmul.f32.vlgmr.msra.gmra.mxu3 %v1407_v59  ;;  %v1374_v19 = vsub.f32 1.0, %v1373_v18 }
 0xad5   :  { %v1375_v25 = vmul.f32 %v1621_v16, %v1374_v19 }
 0xad7   :  { %v1376_v58 = vadd.f32 %v1621_v16, %v1375_v25 }
 0xad9   :  { %v1380_v36 = vsel %vm1379_vm6, %v1621_v16, %v1376_v58 }
 0xada   :  { %v1385_v8 = vsel %vm1382_vm7, %v1384_v24, %v1380_v36 }
 0xadb   :  { %v1430_v47 = vsub.f32 1.0, %v1385_v8 }
 0xadd   :  { %v1431_v50 = vmul.f32 %v1430_v47, %v3000_v20 }
 0xb56   :  { %v1425_v21 = vpop.f32.mrf.mxu3 }
 0xb57   :  { %v1428_v27 = vadd.f32 %v1425_v21, %v1325_v61 }
 0xb59   :  { %1622 = vtanh.f32 %v1428_v27 }
 0xb5f   :  { %v1623_v37 = vpop.eup %1622 }
 0xb60   :  { %v1432_v49 = vmul.f32 %v1623_v37, %v1385_v8 }
 0xb62   :  { %v1433_v48 = vadd.f32 %v1432_v49, %v1431_v50 }
 0xb64   :  { %1450 = vmatmul.f32.vlgmr.msra.gmra.mxu0 %v1433_v48 }
 0xbe1   :  { %v1451_v53 = vpop.f32.mrf.mxu0 }
 0xbe2   :  { %v1452_v22 = vadd.f32 %v2895_v30, %v1451_v53 }
 0xbe4   :  { %v1454_v54 = vmax.f32 %v1452_v22, 0.0 }
 0xbe6   :  { %1471 = vmatmul.f32.vlgmr.msrb.gmra.mxu1 %v1454_v54 }
 0xc63   :  { %v1472_v30 = vpop.f32.mrf.mxu1 }
 0xc64   :  { %v1473_v57 = vadd.f32 %v2922_v29, %v1472_v30 }
 0xc66   :  { %1475 = vst [vmem:[#allocation16 + $0x10] sm:$0xff] %v1473_v57 }
 0xc67   :  { %1491 = dma.vmem_to_hbm [thread:$0]  %s1484_s14, 384, %s1486_s16, [#allocation4], %s1975_s29, %s1975_s29, %s1976_s30  }
 0xc68   :  { %1970 = dma.done.wait [#allocation4], 384  }
 0xc69   :  { %1971 = vsyncadd [#allocation4], 4294966912 }
 0xc6a   :  { %1972 = dma.done.wait [#allocation18], 384  }
 0xc6b   :  { %1973 = vsyncadd [#allocation18], 4294966912 }
 0xc6c   :  { %1513 = vsyncpa [#allocation3], 1 }
 0xc6d   :  { %1514 = vsyncpa [#allocation6], 1 }
 0xc6e   :  { %1515 = vsyncpa [#allocation9], 1 }
 0xc6f   :  { %1516 = vsyncpa [#allocation12], 1 }
 0xc70   :  { %1517 = vsyncpa [#allocation15], 1 }
 0xc71   :  { %1518 = vsyncpa [#allocation4], 1 }
 0xc72   :  { %1519 = vsyncpa [#allocation18], 1 }

</bundles_post_ra>
